<compile_context>
chip_gen: v6e
topology: v6e:2x2x1
jax: 0.10.0
libtpu: 0.0.40
codegen_flags: <defaults>
</compile_context>

<pallas_src>
import functools

import jax
import jax.numpy as jnp
from jax import lax
from jax.experimental import pallas as pl
from jax.experimental.pallas import tpu as pltpu


# ----------------------------- in-kernel math helpers -----------------------------

def _elu(x):
    # elu(x) = x if x > 0 else exp(x) - 1   (alpha = 1, matches F.elu default)
    return jnp.where(x > 0, x, jnp.exp(jnp.minimum(x, 0.0)) - 1.0)


def _softplus(x):
    # numerically stable softplus = max(x, 0) + log1p(exp(-|x|))
    return jnp.maximum(x, 0.0) + jnp.log1p(jnp.exp(-jnp.abs(x)))


# ----------------------------------- fused kernel ----------------------------------

def _ladder_fused_kernel(
    # inputs
    x_ref,                     # (1, S*N, T*F)   trajectories for one batch element
    rbig_ref, sbig_ref,        # (S*E, S*N)      receiver / sender one-hot (block-diag over S)
    rt_ref,                    # (S*N, S*E)      edge2node matrix, pre-scaled by 1/N
    pool_ref,                  # (S*E, E)        subject-mean pooling, pre-scaled by 1/S
    bcast_ref,                 # (E, S*E)        broadcast back over subjects
    w1a_ref, b1a_ref, w1b_ref, b1b_ref,                        # msg_fc1
    w2ar_ref, w2as_ref, b2a_ref, w2b_ref, b2b_ref,             # msg_fc2 (layer1 split recv/send)
    w3a_ref, b3a_ref, w3b_ref, b3b_ref,                        # msg_fc3
    w4ar_ref, w4as_ref, w4ak_ref, b4a_ref, w4b_ref, b4b_ref,   # hidden_fc (split recv/send/skip)
    mwt_ref, mb_ref,           # (1, H), (1, 1)  mean_fc (transposed)
    vwt_ref, vb_ref,           # (1, H), (1, 1)  variance_fc (transposed)
    # outputs
    mean_ref, var_ref,         # (1, 1, S*E) each
    p1_ref, p2_ref,            # (1, 1, E) each
    *, num_subjects, min_var, max_var):

    dot = functools.partial(jnp.dot, preferred_element_type=jnp.float32)

    def dot_nt(a, b):
        # a:(m,k) x b:(n,k) -> (m,n), contraction on last dims (no explicit transpose)
        return lax.dot_general(a, b, (((1,), (1,)), ((), ())),
                               preferred_element_type=jnp.float32)

    x = x_ref[0]                                              # (S*N, T*F)
    rbig = rbig_ref[...]
    sbig = sbig_ref[...]

    # ---- msg_fc1 (per node) ----
    h = _elu(dot(x, w1a_ref[...]) + b1a_ref[...])
    xn1 = _elu(dot(h, w1b_ref[...]) + b1b_ref[...])           # (S*N, H)

    # ---- node2edge + msg_fc2 (concat folded into split weights) ----
    xr = dot(rbig, xn1)                                       # receivers  (S*E, H)
    xs = dot(sbig, xn1)                                       # senders    (S*E, H)
    h = _elu(dot(xr, w2ar_ref[...]) + dot(xs, w2as_ref[...]) + b2a_ref[...])
    x_skip = _elu(dot(h, w2b_ref[...]) + b2b_ref[...])        # (S*E, H)

    # ---- edge2node (1/N folded into rt_ref) + msg_fc3 ----
    xn = dot(rt_ref[...], x_skip)                             # (S*N, H)
    h = _elu(dot(xn, w3a_ref[...]) + b3a_ref[...])
    xn3 = _elu(dot(h, w3b_ref[...]) + b3b_ref[...])           # (S*N, H)

    # ---- node2edge + skip concat + hidden_fc (concat folded into split weights) ----
    xr = dot(rbig, xn3)
    xs = dot(sbig, xn3)
    h = _elu(dot(xr, w4ar_ref[...]) + dot(xs, w4as_ref[...])
             + dot(x_skip, w4ak_ref[...]) + b4a_ref[...])
    out = _elu(dot(h, w4b_ref[...]) + b4b_ref[...])           # (S*E, H)

    # ---- mean / variance heads, lane-dense row layout (1, S*E) ----
    mu = dot_nt(mwt_ref[...], out) + mb_ref[...]                           # (1, S*E)
    var = jnp.clip(_softplus(dot_nt(vwt_ref[...], out) + vb_ref[...]),
                   min_var, max_var)                                       # (1, S*E)
    mean_ref[0] = mu
    var_ref[0] = var

    # ---- Entity2CommonEncoder (numeric branch), fused on the tail ----
    m = dot(mu, pool_ref[...])                                # (1, E)  mean over subjects
    d = mu - dot(m, bcast_ref[...])                           # (1, S*E) deviations
    v = dot(d * d, pool_ref[...])                             # (1, E)  population variance
    # NOTE: v == 0 gives inf/NaN, exactly like the PyTorch reference (prec = var**-1 * n).
    prec = float(num_subjects) / v
    ip1 = 1.0 / (prec + 1.0)
    p1_ref[0] = ip1 * prec * m
    p2_ref[0] = jnp.clip(ip1, min_var, max_var)


# --------------------------------- forward wrapper ----------------------------------

@functools.partial(jax.jit, static_argnames=("min_var", "max_var"))
def ladder_encoder_forward(data, weights, *, min_var, max_var):
    """data: (batch, num_subjects, context_length, num_nodes, feature_dim) f32."""
    B, S, T, N, F = data.shape
    recv_idx, send_idx = weights['recv_idx'], weights['send_idx']
    E = recv_idx.shape[0]
    IN = T * F
    H = weights['msg_fc1'][2].shape[0]   # w1b is (H, H)

    # torch: permute(0,1,3,2,4).view(-1, N, T*F)  -> flattened to (B, S*N, T*F) so the
    # kernel needs no in-kernel reshapes.
    x = jnp.transpose(data, (0, 1, 3, 2, 4)).reshape(B, S * N, IN)

    # Constant selection / pooling matrices (block-diagonal over subjects).
    rel_rec = jax.nn.one_hot(recv_idx, N, dtype=jnp.float32)       # (E, N)
    rel_send = jax.nn.one_hot(send_idx, N, dtype=jnp.float32)      # (E, N)
    eye_s = jnp.eye(S, dtype=jnp.float32)
    rbig = jnp.kron(eye_s, rel_rec)                                # (S*E, S*N)
    sbig = jnp.kron(eye_s, rel_send)                               # (S*E, S*N)
    rt_scaled = rbig.T / float(N)                                  # edge2node incl. 1/N
    g = jnp.tile(jnp.eye(E, dtype=jnp.float32), (S, 1))            # (S*E, E)
    pool_avg = g / float(S)                                        # subject mean incl. 1/S
    bcast = g.T                                                    # (E, S*E)

    w1a, b1a, w1b, b1b = weights['msg_fc1']
    w2a, b2a, w2b, b2b = weights['msg_fc2']
    w3a, b3a, w3b, b3b = weights['msg_fc3']
    w4a, b4a, w4b, b4b = weights['hidden_fc']
    mw, mb = weights['mean_fc']            # (H, 1), (1,)
    vw, vb = weights['variance_fc']        # (H, 1), (1,)

    # Fold the feature-axis concatenations into split first-layer weights.
    w2ar, w2as = w2a[:H], w2a[H:]
    w4ar, w4as, w4ak = w4a[:H], w4a[H:2 * H], w4a[2 * H:]

    ins = (x, rbig, sbig, rt_scaled, pool_avg, bcast,
           w1a, b1a[None, :], w1b, b1b[None, :],
           w2ar, w2as, b2a[None, :], w2b, b2b[None, :],
           w3a, b3a[None, :], w3b, b3b[None, :],
           w4ar, w4as, w4ak, b4a[None, :], w4b, b4b[None, :],
           mw.T, mb.reshape(1, 1), vw.T, vb.reshape(1, 1))

    def const_spec(a):
        nd = a.ndim
        return pl.BlockSpec(a.shape, lambda b, _nd=nd: (0,) * _nd)  # VMEM-resident constants

    in_specs = [pl.BlockSpec((1, S * N, IN), lambda b: (b, 0, 0))]
    in_specs += [const_spec(a) for a in ins[1:]]

    out_shape = (
        jax.ShapeDtypeStruct((B, 1, S * E), jnp.float32),   # mean_z (flat edges, lane-dense)
        jax.ShapeDtypeStruct((B, 1, S * E), jnp.float32),   # var_z
        jax.ShapeDtypeStruct((B, 1, E), jnp.float32),       # param1_zbar
        jax.ShapeDtypeStruct((B, 1, E), jnp.float32),       # param2_zbar
    )
    out_specs = (
        pl.BlockSpec((1, 1, S * E), lambda b: (b, 0, 0)),
        pl.BlockSpec((1, 1, S * E), lambda b: (b, 0, 0)),
        pl.BlockSpec((1, 1, E), lambda b: (b, 0, 0)),
        pl.BlockSpec((1, 1, E), lambda b: (b, 0, 0)),
    )

    kernel = functools.partial(_ladder_fused_kernel,
                               num_subjects=S, min_var=min_var, max_var=max_var)

    mean_z, var_z, p1, p2 = pl.pallas_call(
        kernel,
        grid=(B,),
        in_specs=in_specs,
        out_specs=out_specs,
        out_shape=out_shape,
        compiler_params=pltpu.CompilerParams(
            dimension_semantics=("parallel",)),   # batch axis splits across TCs
    )(*ins)

    # torch: mu.view(batch, -1, mu.size(1)) with mu of shape (BS, E, 1) -> (B, S, E)
    return (mean_z.reshape(B, S, E), var_z.reshape(B, S, E),
            p1.reshape(B, E), p2.reshape(B, E))


# ----------------------------------- parameters -------------------------------------

def _linear_params(key, fan_in, fan_out):
    kw, kb = jax.random.split(key)
    bound = 1.0 / float(fan_in) ** 0.5
    w = jax.random.uniform(kw, (fan_in, fan_out), jnp.float32, -bound, bound)
    b = jax.random.uniform(kb, (fan_out,), jnp.float32, -bound, bound)
    return w, b


def _mlp_params(key, fan_in, hidden, fan_out):
    k1, k2 = jax.random.split(key)
    w1, b1 = _linear_params(k1, fan_in, hidden)
    w2, b2 = _linear_params(k2, hidden, fan_out)
    return (w1, b1, w2, b2)


def make_edge_indices(num_nodes, include_diag):
    recv, send = [], []
    for i in range(num_nodes):
        for j in range(num_nodes):
            if i == j and not include_diag:
                continue
            recv.append(i)
            send.append(j)
    return jnp.array(recv, jnp.int32), jnp.array(send, jnp.int32)


def init_ladder_encoder(key, params):
    N = params['num_nodes']
    H = params['encoder_hidden_dim']
    in_dim = params['context_length'] * params['feature_dim']
    keys = jax.random.split(key, 6)
    recv_idx, send_idx = make_edge_indices(N, params['include_diag'])
    return {
        'recv_idx': recv_idx,
        'send_idx': send_idx,
        'msg_fc1': _mlp_params(keys[0], in_dim, H, H),
        'msg_fc2': _mlp_params(keys[1], 2 * H, H, H),
        'msg_fc3': _mlp_params(keys[2], H, H, H),
        'hidden_fc': _mlp_params(keys[3], 3 * H, H, H),
        'mean_fc': _linear_params(keys[4], H, 1),
        'variance_fc': _linear_params(keys[5], H, 1),
    }


# ----------------------------- pure-JAX reference (sanity) ---------------------------

def _reference_forward(data, params, weights):
    B, S, T, N, F = data.shape
    recv_idx, send_idx = weights['recv_idx'], weights['send_idx']
    E = recv_idx.shape[0]
    BS = B * S

    def mlp(x, p):
        w1, b1, w2, b2 = p
        return jax.nn.elu(jax.nn.elu(x @ w1 + b1) @ w2 + b2)

    x = jnp.transpose(data, (0, 1, 3, 2, 4)).reshape(BS, N, T * F)
    x = mlp(x, weights['msg_fc1'])
    x = jnp.concatenate([x[:, recv_idx, :], x[:, send_idx, :]], axis=2)
    x = mlp(x, weights['msg_fc2'])
    x_skip = x
    rel_rec = jax.nn.one_hot(recv_idx, N, dtype=jnp.float32)
    x = jnp.einsum('ne,bef->bnf', rel_rec.T, x) / N
    x = mlp(x, weights['msg_fc3'])
    x = jnp.concatenate([x[:, recv_idx, :], x[:, send_idx, :]], axis=2)
    x = jnp.concatenate([x, x_skip], axis=2)
    out = mlp(x, weights['hidden_fc'])
    mw, mb = weights['mean_fc']
    vw, vb = weights['variance_fc']
    mu = out @ mw + mb
    var = jnp.clip(jax.nn.softplus(out @ vw + vb), params['min_var'], params['max_var'])
    mean_z = mu.reshape(B, S, E)
    var_z = var.reshape(B, S, E)
    m = jnp.mean(mean_z, axis=1)
    v = jnp.mean((mean_z - m[:, None, :]) ** 2, axis=1)
    prec = (1.0 / v) * S
    p1 = (1.0 / (prec + 1.0)) * prec * m
    p2 = jnp.clip(1.0 / (prec + 1.0), params['min_var'], params['max_var'])
    return mean_z, var_z, p1, p2


# ---------------------------------------- main ---------------------------------------

if __name__ == "__main__":
    params = {
        'graph_type': 'numeric',
        'num_nodes': 4,
        'include_diag': False,
        'feature_dim': 2,
        'context_length': 8,
        'encoder_hidden_dim': 32,
        'do_prob': 0.1,          # dropout: identity in eval mode
        'unit_variance': False,
        'min_var': 1e-8,
        'max_var': 100.0,
    }
    B, S = 2, 3
    key = jax.random.PRNGKey(0)
    k_data, k_w = jax.random.split(key)

    data = jax.random.normal(
        k_data,
        (B, S, params['context_length'], params['num_nodes'], params['feature_dim']),
        dtype=jnp.float32)

    weights = init_ladder_encoder(k_w, params)

    mean_z, var_z, p1, p2 = ladder_encoder_forward(
        data, weights, min_var=params['min_var'], max_var=params['max_var'])
    jax.block_until_ready((mean_z, var_z, p1, p2))

    # sanity check against a pure-JAX reference
    r_mean, r_var, r_p1, r_p2 = _reference_forward(data, params, weights)
    E = weights['recv_idx'].shape[0]
    assert mean_z.shape == (B, S, E) and var_z.shape == (B, S, E)
    assert p1.shape == (B, E) and p2.shape == (B, E)
    assert jnp.allclose(mean_z, r_mean, atol=1e-4, rtol=1e-4)
    assert jnp.allclose(var_z, r_var, atol=1e-4, rtol=1e-4)
    assert jnp.allclose(p1, r_p1, atol=1e-4, rtol=1e-4)
    assert jnp.allclose(p2, r_p2, atol=1e-4, rtol=1e-4)

    print("KERNEL_OK")
</pallas_src>

<mosaic_0001>
module attributes {stable_mosaic.version = 11 : i64} {
  func.func @_ladder_fused_kernel(%arg0: i32, %arg1: memref<1x12x16xf32, #tpu.memory_space<vmem>>, %arg2: memref<36x12xf32, #tpu.memory_space<vmem>>, %arg3: memref<36x12xf32, #tpu.memory_space<vmem>>, %arg4: memref<12x36xf32, #tpu.memory_space<vmem>>, %arg5: memref<36x12xf32, #tpu.memory_space<vmem>>, %arg6: memref<12x36xf32, #tpu.memory_space<vmem>>, %arg7: memref<16x32xf32, #tpu.memory_space<vmem>>, %arg8: memref<1x32xf32, #tpu.memory_space<vmem>>, %arg9: memref<32x32xf32, #tpu.memory_space<vmem>>, %arg10: memref<1x32xf32, #tpu.memory_space<vmem>>, %arg11: memref<32x32xf32, #tpu.memory_space<vmem>>, %arg12: memref<32x32xf32, #tpu.memory_space<vmem>>, %arg13: memref<1x32xf32, #tpu.memory_space<vmem>>, %arg14: memref<32x32xf32, #tpu.memory_space<vmem>>, %arg15: memref<1x32xf32, #tpu.memory_space<vmem>>, %arg16: memref<32x32xf32, #tpu.memory_space<vmem>>, %arg17: memref<1x32xf32, #tpu.memory_space<vmem>>, %arg18: memref<32x32xf32, #tpu.memory_space<vmem>>, %arg19: memref<1x32xf32, #tpu.memory_space<vmem>>, %arg20: memref<32x32xf32, #tpu.memory_space<vmem>>, %arg21: memref<32x32xf32, #tpu.memory_space<vmem>>, %arg22: memref<32x32xf32, #tpu.memory_space<vmem>>, %arg23: memref<1x32xf32, #tpu.memory_space<vmem>>, %arg24: memref<32x32xf32, #tpu.memory_space<vmem>>, %arg25: memref<1x32xf32, #tpu.memory_space<vmem>>, %arg26: memref<1x32xf32, #tpu.memory_space<vmem>>, %arg27: memref<1x1xf32, #tpu.memory_space<vmem>>, %arg28: memref<1x32xf32, #tpu.memory_space<vmem>>, %arg29: memref<1x1xf32, #tpu.memory_space<vmem>>, %arg30: memref<1x1x36xf32, #tpu.memory_space<vmem>>, %arg31: memref<1x1x36xf32, #tpu.memory_space<vmem>>, %arg32: memref<1x1x12xf32, #tpu.memory_space<vmem>>, %arg33: memref<1x1x12xf32, #tpu.memory_space<vmem>>) attributes {dimension_semantics = [#tpu.dimension_semantics<parallel>], iteration_bounds = array<i64: 2>, scalar_prefetch = 0 : i64, scratch_operands = 0 : i64, tpu.core_type = #tpu.core_type<tc>, window_params = [{transform_indices = @transform_0, window_bounds = array<i64: 1, 12, 16>}, {pipeline_mode = #tpu.pipeline_mode<synchronous>, transform_indices = @transform_1, window_bounds = array<i64: 36, 12>}, {pipeline_mode = #tpu.pipeline_mode<synchronous>, transform_indices = @transform_2, window_bounds = array<i64: 36, 12>}, {pipeline_mode = #tpu.pipeline_mode<synchronous>, transform_indices = @transform_3, window_bounds = array<i64: 12, 36>}, {pipeline_mode = #tpu.pipeline_mode<synchronous>, transform_indices = @transform_4, window_bounds = array<i64: 36, 12>}, {pipeline_mode = #tpu.pipeline_mode<synchronous>, transform_indices = @transform_5, window_bounds = array<i64: 12, 36>}, {pipeline_mode = #tpu.pipeline_mode<synchronous>, transform_indices = @transform_6, window_bounds = array<i64: 16, 32>}, {pipeline_mode = #tpu.pipeline_mode<synchronous>, transform_indices = @transform_7, window_bounds = array<i64: 1, 32>}, {pipeline_mode = #tpu.pipeline_mode<synchronous>, transform_indices = @transform_8, window_bounds = array<i64: 32, 32>}, {pipeline_mode = #tpu.pipeline_mode<synchronous>, transform_indices = @transform_9, window_bounds = array<i64: 1, 32>}, {pipeline_mode = #tpu.pipeline_mode<synchronous>, transform_indices = @transform_10, window_bounds = array<i64: 32, 32>}, {pipeline_mode = #tpu.pipeline_mode<synchronous>, transform_indices = @transform_11, window_bounds = array<i64: 32, 32>}, {pipeline_mode = #tpu.pipeline_mode<synchronous>, transform_indices = @transform_12, window_bounds = array<i64: 1, 32>}, {pipeline_mode = #tpu.pipeline_mode<synchronous>, transform_indices = @transform_13, window_bounds = array<i64: 32, 32>}, {pipeline_mode = #tpu.pipeline_mode<synchronous>, transform_indices = @transform_14, window_bounds = array<i64: 1, 32>}, {pipeline_mode = #tpu.pipeline_mode<synchronous>, transform_indices = @transform_15, window_bounds = array<i64: 32, 32>}, {pipeline_mode = #tpu.pipeline_mode<synchronous>, transform_indices = @transform_16, window_bounds = array<i64: 1, 32>}, {pipeline_mode = #tpu.pipeline_mode<synchronous>, transform_indices = @transform_17, window_bounds = array<i64: 32, 32>}, {pipeline_mode = #tpu.pipeline_mode<synchronous>, transform_indices = @transform_18, window_bounds = array<i64: 1, 32>}, {pipeline_mode = #tpu.pipeline_mode<synchronous>, transform_indices = @transform_19, window_bounds = array<i64: 32, 32>}, {pipeline_mode = #tpu.pipeline_mode<synchronous>, transform_indices = @transform_20, window_bounds = array<i64: 32, 32>}, {pipeline_mode = #tpu.pipeline_mode<synchronous>, transform_indices = @transform_21, window_bounds = array<i64: 32, 32>}, {pipeline_mode = #tpu.pipeline_mode<synchronous>, transform_indices = @transform_22, window_bounds = array<i64: 1, 32>}, {pipeline_mode = #tpu.pipeline_mode<synchronous>, transform_indices = @transform_23, window_bounds = array<i64: 32, 32>}, {pipeline_mode = #tpu.pipeline_mode<synchronous>, transform_indices = @transform_24, window_bounds = array<i64: 1, 32>}, {pipeline_mode = #tpu.pipeline_mode<synchronous>, transform_indices = @transform_25, window_bounds = array<i64: 1, 32>}, {pipeline_mode = #tpu.pipeline_mode<synchronous>, transform_indices = @transform_26, window_bounds = array<i64: 1, 1>}, {pipeline_mode = #tpu.pipeline_mode<synchronous>, transform_indices = @transform_27, window_bounds = array<i64: 1, 32>}, {pipeline_mode = #tpu.pipeline_mode<synchronous>, transform_indices = @transform_28, window_bounds = array<i64: 1, 1>}, {transform_indices = @transform_29, window_bounds = array<i64: 1, 1, 36>}, {transform_indices = @transform_30, window_bounds = array<i64: 1, 1, 36>}, {transform_indices = @transform_31, window_bounds = array<i64: 1, 1, 12>}, {transform_indices = @transform_32, window_bounds = array<i64: 1, 1, 12>}]} {
    %c0 = arith.constant 0 : index
    %c0_0 = arith.constant 0 : index
    %c0_1 = arith.constant 0 : index
    %0 = vector.load %arg1[%c0, %c0_0, %c0_1] : memref<1x12x16xf32, #tpu.memory_space<vmem>>, vector<1x12x16xf32>
    %1 = vector.shape_cast %0 : vector<1x12x16xf32> to vector<12x16xf32>
    %c0_2 = arith.constant 0 : index
    %c0_3 = arith.constant 0 : index
    %2 = vector.load %arg2[%c0_2, %c0_3] : memref<36x12xf32, #tpu.memory_space<vmem>>, vector<36x12xf32>
    %c0_4 = arith.constant 0 : index
    %c0_5 = arith.constant 0 : index
    %3 = vector.load %arg3[%c0_4, %c0_5] : memref<36x12xf32, #tpu.memory_space<vmem>>, vector<36x12xf32>
    %c0_6 = arith.constant 0 : index
    %c0_7 = arith.constant 0 : index
    %4 = vector.load %arg7[%c0_6, %c0_7] : memref<16x32xf32, #tpu.memory_space<vmem>>, vector<16x32xf32>
    %cst = arith.constant dense<0.000000e+00> : vector<12x32xf32>
    %5 = tpu.matmul %1, %4, %cst {dimension_numbers = #tpu.dot_dimension_numbers<[1], [0], [0], [1], [0, 0, 1, 1], [], []>} : vector<12x16xf32>, vector<16x32xf32>, vector<12x32xf32> -> vector<12x32xf32>
    %c0_8 = arith.constant 0 : index
    %c0_9 = arith.constant 0 : index
    %6 = vector.load %arg8[%c0_8, %c0_9] : memref<1x32xf32, #tpu.memory_space<vmem>>, vector<1x32xf32>
    %7 = vector.broadcast %6 : vector<1x32xf32> to vector<12x32xf32>
    %8 = arith.addf %5, %7 : vector<12x32xf32>
    %cst_10 = arith.constant 0.000000e+00 : f32
    %9 = vector.broadcast %cst_10 : f32 to vector<12x32xf32>
    %10 = arith.cmpf ogt, %8, %9 : vector<12x32xf32>
    %cst_11 = arith.constant 0.000000e+00 : f32
    %11 = vector.broadcast %cst_11 : f32 to vector<12x32xf32>
    %12 = arith.minimumf %8, %11 : vector<12x32xf32>
    %13 = math.exp %12 : vector<12x32xf32>
    %cst_12 = arith.constant 1.000000e+00 : f32
    %14 = vector.broadcast %cst_12 : f32 to vector<12x32xf32>
    %15 = arith.subf %13, %14 : vector<12x32xf32>
    %16 = arith.select %10, %8, %15 : vector<12x32xi1>, vector<12x32xf32>
    %c0_13 = arith.constant 0 : index
    %c0_14 = arith.constant 0 : index
    %17 = vector.load %arg9[%c0_13, %c0_14] : memref<32x32xf32, #tpu.memory_space<vmem>>, vector<32x32xf32>
    %cst_15 = arith.constant dense<0.000000e+00> : vector<12x32xf32>
    %18 = tpu.matmul %16, %17, %cst_15 {dimension_numbers = #tpu.dot_dimension_numbers<[1], [0], [0], [1], [0, 0, 1, 1], [], []>} : vector<12x32xf32>, vector<32x32xf32>, vector<12x32xf32> -> vector<12x32xf32>
    %c0_16 = arith.constant 0 : index
    %c0_17 = arith.constant 0 : index
    %19 = vector.load %arg10[%c0_16, %c0_17] : memref<1x32xf32, #tpu.memory_space<vmem>>, vector<1x32xf32>
    %20 = vector.broadcast %19 : vector<1x32xf32> to vector<12x32xf32>
    %21 = arith.addf %18, %20 : vector<12x32xf32>
    %cst_18 = arith.constant 0.000000e+00 : f32
    %22 = vector.broadcast %cst_18 : f32 to vector<12x32xf32>
    %23 = arith.cmpf ogt, %21, %22 : vector<12x32xf32>
    %cst_19 = arith.constant 0.000000e+00 : f32
    %24 = vector.broadcast %cst_19 : f32 to vector<12x32xf32>
    %25 = arith.minimumf %21, %24 : vector<12x32xf32>
    %26 = math.exp %25 : vector<12x32xf32>
    %cst_20 = arith.constant 1.000000e+00 : f32
    %27 = vector.broadcast %cst_20 : f32 to vector<12x32xf32>
    %28 = arith.subf %26, %27 : vector<12x32xf32>
    %29 = arith.select %23, %21, %28 : vector<12x32xi1>, vector<12x32xf32>
    %cst_21 = arith.constant dense<0.000000e+00> : vector<36x32xf32>
    %30 = tpu.matmul %2, %29, %cst_21 {dimension_numbers = #tpu.dot_dimension_numbers<[1], [0], [0], [1], [0, 0, 1, 1], [], []>} : vector<36x12xf32>, vector<12x32xf32>, vector<36x32xf32> -> vector<36x32xf32>
    %cst_22 = arith.constant dense<0.000000e+00> : vector<36x32xf32>
    %31 = tpu.matmul %3, %29, %cst_22 {dimension_numbers = #tpu.dot_dimension_numbers<[1], [0], [0], [1], [0, 0, 1, 1], [], []>} : vector<36x12xf32>, vector<12x32xf32>, vector<36x32xf32> -> vector<36x32xf32>
    %c0_23 = arith.constant 0 : index
    %c0_24 = arith.constant 0 : index
    %32 = vector.load %arg11[%c0_23, %c0_24] : memref<32x32xf32, #tpu.memory_space<vmem>>, vector<32x32xf32>
    %cst_25 = arith.constant dense<0.000000e+00> : vector<36x32xf32>
    %33 = tpu.matmul %30, %32, %cst_25 {dimension_numbers = #tpu.dot_dimension_numbers<[1], [0], [0], [1], [0, 0, 1, 1], [], []>} : vector<36x32xf32>, vector<32x32xf32>, vector<36x32xf32> -> vector<36x32xf32>
    %c0_26 = arith.constant 0 : index
    %c0_27 = arith.constant 0 : index
    %34 = vector.load %arg12[%c0_26, %c0_27] : memref<32x32xf32, #tpu.memory_space<vmem>>, vector<32x32xf32>
    %cst_28 = arith.constant dense<0.000000e+00> : vector<36x32xf32>
    %35 = tpu.matmul %31, %34, %cst_28 {dimension_numbers = #tpu.dot_dimension_numbers<[1], [0], [0], [1], [0, 0, 1, 1], [], []>} : vector<36x32xf32>, vector<32x32xf32>, vector<36x32xf32> -> vector<36x32xf32>
    %36 = arith.addf %33, %35 : vector<36x32xf32>
    %c0_29 = arith.constant 0 : index
    %c0_30 = arith.constant 0 : index
    %37 = vector.load %arg13[%c0_29, %c0_30] : memref<1x32xf32, #tpu.memory_space<vmem>>, vector<1x32xf32>
    %38 = vector.broadcast %37 : vector<1x32xf32> to vector<36x32xf32>
    %39 = arith.addf %36, %38 : vector<36x32xf32>
    %cst_31 = arith.constant 0.000000e+00 : f32
    %40 = vector.broadcast %cst_31 : f32 to vector<36x32xf32>
    %41 = arith.cmpf ogt, %39, %40 : vector<36x32xf32>
    %cst_32 = arith.constant 0.000000e+00 : f32
    %42 = vector.broadcast %cst_32 : f32 to vector<36x32xf32>
    %43 = arith.minimumf %39, %42 : vector<36x32xf32>
    %44 = math.exp %43 : vector<36x32xf32>
    %cst_33 = arith.constant 1.000000e+00 : f32
    %45 = vector.broadcast %cst_33 : f32 to vector<36x32xf32>
    %46 = arith.subf %44, %45 : vector<36x32xf32>
    %47 = arith.select %41, %39, %46 : vector<36x32xi1>, vector<36x32xf32>
    %c0_34 = arith.constant 0 : index
    %c0_35 = arith.constant 0 : index
    %48 = vector.load %arg14[%c0_34, %c0_35] : memref<32x32xf32, #tpu.memory_space<vmem>>, vector<32x32xf32>
    %cst_36 = arith.constant dense<0.000000e+00> : vector<36x32xf32>
    %49 = tpu.matmul %47, %48, %cst_36 {dimension_numbers = #tpu.dot_dimension_numbers<[1], [0], [0], [1], [0, 0, 1, 1], [], []>} : vector<36x32xf32>, vector<32x32xf32>, vector<36x32xf32> -> vector<36x32xf32>
    %c0_37 = arith.constant 0 : index
    %c0_38 = arith.constant 0 : index
    %50 = vector.load %arg15[%c0_37, %c0_38] : memref<1x32xf32, #tpu.memory_space<vmem>>, vector<1x32xf32>
    %51 = vector.broadcast %50 : vector<1x32xf32> to vector<36x32xf32>
    %52 = arith.addf %49, %51 : vector<36x32xf32>
    %cst_39 = arith.constant 0.000000e+00 : f32
    %53 = vector.broadcast %cst_39 : f32 to vector<36x32xf32>
    %54 = arith.cmpf ogt, %52, %53 : vector<36x32xf32>
    %cst_40 = arith.constant 0.000000e+00 : f32
    %55 = vector.broadcast %cst_40 : f32 to vector<36x32xf32>
    %56 = arith.minimumf %52, %55 : vector<36x32xf32>
    %57 = math.exp %56 : vector<36x32xf32>
    %cst_41 = arith.constant 1.000000e+00 : f32
    %58 = vector.broadcast %cst_41 : f32 to vector<36x32xf32>
    %59 = arith.subf %57, %58 : vector<36x32xf32>
    %60 = arith.select %54, %52, %59 : vector<36x32xi1>, vector<36x32xf32>
    %c0_42 = arith.constant 0 : index
    %c0_43 = arith.constant 0 : index
    %61 = vector.load %arg4[%c0_42, %c0_43] : memref<12x36xf32, #tpu.memory_space<vmem>>, vector<12x36xf32>
    %cst_44 = arith.constant dense<0.000000e+00> : vector<12x32xf32>
    %62 = tpu.matmul %61, %60, %cst_44 {dimension_numbers = #tpu.dot_dimension_numbers<[1], [0], [0], [1], [0, 0, 1, 1], [], []>} : vector<12x36xf32>, vector<36x32xf32>, vector<12x32xf32> -> vector<12x32xf32>
    %c0_45 = arith.constant 0 : index
    %c0_46 = arith.constant 0 : index
    %63 = vector.load %arg16[%c0_45, %c0_46] : memref<32x32xf32, #tpu.memory_space<vmem>>, vector<32x32xf32>
    %cst_47 = arith.constant dense<0.000000e+00> : vector<12x32xf32>
    %64 = tpu.matmul %62, %63, %cst_47 {dimension_numbers = #tpu.dot_dimension_numbers<[1], [0], [0], [1], [0, 0, 1, 1], [], []>} : vector<12x32xf32>, vector<32x32xf32>, vector<12x32xf32> -> vector<12x32xf32>
    %c0_48 = arith.constant 0 : index
    %c0_49 = arith.constant 0 : index
    %65 = vector.load %arg17[%c0_48, %c0_49] : memref<1x32xf32, #tpu.memory_space<vmem>>, vector<1x32xf32>
    %66 = vector.broadcast %65 : vector<1x32xf32> to vector<12x32xf32>
    %67 = arith.addf %64, %66 : vector<12x32xf32>
    %cst_50 = arith.constant 0.000000e+00 : f32
    %68 = vector.broadcast %cst_50 : f32 to vector<12x32xf32>
    %69 = arith.cmpf ogt, %67, %68 : vector<12x32xf32>
    %cst_51 = arith.constant 0.000000e+00 : f32
    %70 = vector.broadcast %cst_51 : f32 to vector<12x32xf32>
    %71 = arith.minimumf %67, %70 : vector<12x32xf32>
    %72 = math.exp %71 : vector<12x32xf32>
    %cst_52 = arith.constant 1.000000e+00 : f32
    %73 = vector.broadcast %cst_52 : f32 to vector<12x32xf32>
    %74 = arith.subf %72, %73 : vector<12x32xf32>
    %75 = arith.select %69, %67, %74 : vector<12x32xi1>, vector<12x32xf32>
    %c0_53 = arith.constant 0 : index
    %c0_54 = arith.constant 0 : index
    %76 = vector.load %arg18[%c0_53, %c0_54] : memref<32x32xf32, #tpu.memory_space<vmem>>, vector<32x32xf32>
    %cst_55 = arith.constant dense<0.000000e+00> : vector<12x32xf32>
    %77 = tpu.matmul %75, %76, %cst_55 {dimension_numbers = #tpu.dot_dimension_numbers<[1], [0], [0], [1], [0, 0, 1, 1], [], []>} : vector<12x32xf32>, vector<32x32xf32>, vector<12x32xf32> -> vector<12x32xf32>
    %c0_56 = arith.constant 0 : index
    %c0_57 = arith.constant 0 : index
    %78 = vector.load %arg19[%c0_56, %c0_57] : memref<1x32xf32, #tpu.memory_space<vmem>>, vector<1x32xf32>
    %79 = vector.broadcast %78 : vector<1x32xf32> to vector<12x32xf32>
    %80 = arith.addf %77, %79 : vector<12x32xf32>
    %cst_58 = arith.constant 0.000000e+00 : f32
    %81 = vector.broadcast %cst_58 : f32 to vector<12x32xf32>
    %82 = arith.cmpf ogt, %80, %81 : vector<12x32xf32>
    %cst_59 = arith.constant 0.000000e+00 : f32
    %83 = vector.broadcast %cst_59 : f32 to vector<12x32xf32>
    %84 = arith.minimumf %80, %83 : vector<12x32xf32>
    %85 = math.exp %84 : vector<12x32xf32>
    %cst_60 = arith.constant 1.000000e+00 : f32
    %86 = vector.broadcast %cst_60 : f32 to vector<12x32xf32>
    %87 = arith.subf %85, %86 : vector<12x32xf32>
    %88 = arith.select %82, %80, %87 : vector<12x32xi1>, vector<12x32xf32>
    %cst_61 = arith.constant dense<0.000000e+00> : vector<36x32xf32>
    %89 = tpu.matmul %2, %88, %cst_61 {dimension_numbers = #tpu.dot_dimension_numbers<[1], [0], [0], [1], [0, 0, 1, 1], [], []>} : vector<36x12xf32>, vector<12x32xf32>, vector<36x32xf32> -> vector<36x32xf32>
    %cst_62 = arith.constant dense<0.000000e+00> : vector<36x32xf32>
    %90 = tpu.matmul %3, %88, %cst_62 {dimension_numbers = #tpu.dot_dimension_numbers<[1], [0], [0], [1], [0, 0, 1, 1], [], []>} : vector<36x12xf32>, vector<12x32xf32>, vector<36x32xf32> -> vector<36x32xf32>
    %c0_63 = arith.constant 0 : index
    %c0_64 = arith.constant 0 : index
    %91 = vector.load %arg20[%c0_63, %c0_64] : memref<32x32xf32, #tpu.memory_space<vmem>>, vector<32x32xf32>
    %cst_65 = arith.constant dense<0.000000e+00> : vector<36x32xf32>
    %92 = tpu.matmul %89, %91, %cst_65 {dimension_numbers = #tpu.dot_dimension_numbers<[1], [0], [0], [1], [0, 0, 1, 1], [], []>} : vector<36x32xf32>, vector<32x32xf32>, vector<36x32xf32> -> vector<36x32xf32>
    %c0_66 = arith.constant 0 : index
    %c0_67 = arith.constant 0 : index
    %93 = vector.load %arg21[%c0_66, %c0_67] : memref<32x32xf32, #tpu.memory_space<vmem>>, vector<32x32xf32>
    %cst_68 = arith.constant dense<0.000000e+00> : vector<36x32xf32>
    %94 = tpu.matmul %90, %93, %cst_68 {dimension_numbers = #tpu.dot_dimension_numbers<[1], [0], [0], [1], [0, 0, 1, 1], [], []>} : vector<36x32xf32>, vector<32x32xf32>, vector<36x32xf32> -> vector<36x32xf32>
    %95 = arith.addf %92, %94 : vector<36x32xf32>
    %c0_69 = arith.constant 0 : index
    %c0_70 = arith.constant 0 : index
    %96 = vector.load %arg22[%c0_69, %c0_70] : memref<32x32xf32, #tpu.memory_space<vmem>>, vector<32x32xf32>
    %cst_71 = arith.constant dense<0.000000e+00> : vector<36x32xf32>
    %97 = tpu.matmul %60, %96, %cst_71 {dimension_numbers = #tpu.dot_dimension_numbers<[1], [0], [0], [1], [0, 0, 1, 1], [], []>} : vector<36x32xf32>, vector<32x32xf32>, vector<36x32xf32> -> vector<36x32xf32>
    %98 = arith.addf %95, %97 : vector<36x32xf32>
    %c0_72 = arith.constant 0 : index
    %c0_73 = arith.constant 0 : index
    %99 = vector.load %arg23[%c0_72, %c0_73] : memref<1x32xf32, #tpu.memory_space<vmem>>, vector<1x32xf32>
    %100 = vector.broadcast %99 : vector<1x32xf32> to vector<36x32xf32>
    %101 = arith.addf %98, %100 : vector<36x32xf32>
    %cst_74 = arith.constant 0.000000e+00 : f32
    %102 = vector.broadcast %cst_74 : f32 to vector<36x32xf32>
    %103 = arith.cmpf ogt, %101, %102 : vector<36x32xf32>
    %cst_75 = arith.constant 0.000000e+00 : f32
    %104 = vector.broadcast %cst_75 : f32 to vector<36x32xf32>
    %105 = arith.minimumf %101, %104 : vector<36x32xf32>
    %106 = math.exp %105 : vector<36x32xf32>
    %cst_76 = arith.constant 1.000000e+00 : f32
    %107 = vector.broadcast %cst_76 : f32 to vector<36x32xf32>
    %108 = arith.subf %106, %107 : vector<36x32xf32>
    %109 = arith.select %103, %101, %108 : vector<36x32xi1>, vector<36x32xf32>
    %c0_77 = arith.constant 0 : index
    %c0_78 = arith.constant 0 : index
    %110 = vector.load %arg24[%c0_77, %c0_78] : memref<32x32xf32, #tpu.memory_space<vmem>>, vector<32x32xf32>
    %cst_79 = arith.constant dense<0.000000e+00> : vector<36x32xf32>
    %111 = tpu.matmul %109, %110, %cst_79 {dimension_numbers = #tpu.dot_dimension_numbers<[1], [0], [0], [1], [0, 0, 1, 1], [], []>} : vector<36x32xf32>, vector<32x32xf32>, vector<36x32xf32> -> vector<36x32xf32>
    %c0_80 = arith.constant 0 : index
    %c0_81 = arith.constant 0 : index
    %112 = vector.load %arg25[%c0_80, %c0_81] : memref<1x32xf32, #tpu.memory_space<vmem>>, vector<1x32xf32>
    %113 = vector.broadcast %112 : vector<1x32xf32> to vector<36x32xf32>
    %114 = arith.addf %111, %113 : vector<36x32xf32>
    %cst_82 = arith.constant 0.000000e+00 : f32
    %115 = vector.broadcast %cst_82 : f32 to vector<36x32xf32>
    %116 = arith.cmpf ogt, %114, %115 : vector<36x32xf32>
    %cst_83 = arith.constant 0.000000e+00 : f32
    %117 = vector.broadcast %cst_83 : f32 to vector<36x32xf32>
    %118 = arith.minimumf %114, %117 : vector<36x32xf32>
    %119 = math.exp %118 : vector<36x32xf32>
    %cst_84 = arith.constant 1.000000e+00 : f32
    %120 = vector.broadcast %cst_84 : f32 to vector<36x32xf32>
    %121 = arith.subf %119, %120 : vector<36x32xf32>
    %122 = arith.select %116, %114, %121 : vector<36x32xi1>, vector<36x32xf32>
    %c0_85 = arith.constant 0 : index
    %c0_86 = arith.constant 0 : index
    %123 = vector.load %arg26[%c0_85, %c0_86] : memref<1x32xf32, #tpu.memory_space<vmem>>, vector<1x32xf32>
    %cst_87 = arith.constant dense<0.000000e+00> : vector<1x36xf32>
    %124 = tpu.matmul %123, %122, %cst_87 {dimension_numbers = #tpu.dot_dimension_numbers<[1], [1], [0], [0], [0, 0, 1, 0], [], []>} : vector<1x32xf32>, vector<36x32xf32>, vector<1x36xf32> -> vector<1x36xf32>
    %c0_88 = arith.constant 0 : index
    %c0_89 = arith.constant 0 : index
    %125 = vector.load %arg27[%c0_88, %c0_89] : memref<1x1xf32, #tpu.memory_space<vmem>>, vector<1x1xf32>
    %126 = vector.broadcast %125 : vector<1x1xf32> to vector<1x36xf32>
    %127 = arith.addf %124, %126 : vector<1x36xf32>
    %c0_90 = arith.constant 0 : index
    %c0_91 = arith.constant 0 : index
    %128 = vector.load %arg28[%c0_90, %c0_91] : memref<1x32xf32, #tpu.memory_space<vmem>>, vector<1x32xf32>
    %cst_92 = arith.constant dense<0.000000e+00> : vector<1x36xf32>
    %129 = tpu.matmul %128, %122, %cst_92 {dimension_numbers = #tpu.dot_dimension_numbers<[1], [1], [0], [0], [0, 0, 1, 0], [], []>} : vector<1x32xf32>, vector<36x32xf32>, vector<1x36xf32> -> vector<1x36xf32>
    %c0_93 = arith.constant 0 : index
    %c0_94 = arith.constant 0 : index
    %130 = vector.load %arg29[%c0_93, %c0_94] : memref<1x1xf32, #tpu.memory_space<vmem>>, vector<1x1xf32>
    %131 = vector.broadcast %130 : vector<1x1xf32> to vector<1x36xf32>
    %132 = arith.addf %129, %131 : vector<1x36xf32>
    %cst_95 = arith.constant 0.000000e+00 : f32
    %133 = vector.broadcast %cst_95 : f32 to vector<1x36xf32>
    %134 = arith.maximumf %132, %133 : vector<1x36xf32>
    %135 = math.absf %132 : vector<1x36xf32>
    %cst_96 = arith.constant 0.000000e+00 : f32
    %136 = vector.broadcast %cst_96 : f32 to vector<1x36xf32>
    %137 = arith.subf %136, %135 : vector<1x36xf32>
    %138 = math.exp %137 : vector<1x36xf32>
    %139 = math.log1p %138 : vector<1x36xf32>
    %140 = arith.addf %134, %139 : vector<1x36xf32>
    %cst_97 = arith.constant 9.99999993E-9 : f32
    %cst_98 = arith.constant 1.000000e+02 : f32
    %141 = vector.broadcast %cst_97 : f32 to vector<1x36xf32>
    %142 = arith.maximumf %141, %140 : vector<1x36xf32>
    %143 = vector.broadcast %cst_98 : f32 to vector<1x36xf32>
    %144 = arith.minimumf %143, %142 : vector<1x36xf32>
    %c0_99 = arith.constant 0 : index
    %c0_100 = arith.constant 0 : index
    %c0_101 = arith.constant 0 : index
    %145 = vector.load %arg30[%c0_99, %c0_100, %c0_101] : memref<1x1x36xf32, #tpu.memory_space<vmem>>, vector<1x1x36xf32>
    %146 = vector.shape_cast %145 : vector<1x1x36xf32> to vector<1x36xf32>
    %147 = vector.shape_cast %127 : vector<1x36xf32> to vector<1x1x36xf32>
    tpu.vector_store %arg30[%c0_99, %c0_100, %c0_101], %147 {strides = array<i32>} : memref<1x1x36xf32, #tpu.memory_space<vmem>>, vector<1x1x36xf32>,
    %c0_102 = arith.constant 0 : index
    %c0_103 = arith.constant 0 : index
    %c0_104 = arith.constant 0 : index
    %148 = vector.load %arg31[%c0_102, %c0_103, %c0_104] : memref<1x1x36xf32, #tpu.memory_space<vmem>>, vector<1x1x36xf32>
    %149 = vector.shape_cast %148 : vector<1x1x36xf32> to vector<1x36xf32>
    %150 = vector.shape_cast %144 : vector<1x36xf32> to vector<1x1x36xf32>
    tpu.vector_store %arg31[%c0_102, %c0_103, %c0_104], %150 {strides = array<i32>} : memref<1x1x36xf32, #tpu.memory_space<vmem>>, vector<1x1x36xf32>,
    %c0_105 = arith.constant 0 : index
    %c0_106 = arith.constant 0 : index
    %151 = vector.load %arg5[%c0_105, %c0_106] : memref<36x12xf32, #tpu.memory_space<vmem>>, vector<36x12xf32>
    %cst_107 = arith.constant dense<0.000000e+00> : vector<1x12xf32>
    %152 = tpu.matmul %127, %151, %cst_107 {dimension_numbers = #tpu.dot_dimension_numbers<[1], [0], [0], [1], [0, 0, 1, 1], [], []>} : vector<1x36xf32>, vector<36x12xf32>, vector<1x12xf32> -> vector<1x12xf32>
    %c0_108 = arith.constant 0 : index
    %c0_109 = arith.constant 0 : index
    %153 = vector.load %arg6[%c0_108, %c0_109] : memref<12x36xf32, #tpu.memory_space<vmem>>, vector<12x36xf32>
    %cst_110 = arith.constant dense<0.000000e+00> : vector<1x36xf32>
    %154 = tpu.matmul %152, %153, %cst_110 {dimension_numbers = #tpu.dot_dimension_numbers<[1], [0], [0], [1], [0, 0, 1, 1], [], []>} : vector<1x12xf32>, vector<12x36xf32>, vector<1x36xf32> -> vector<1x36xf32>
    %155 = arith.subf %127, %154 : vector<1x36xf32>
    %156 = arith.mulf %155, %155 : vector<1x36xf32>
    %c0_111 = arith.constant 0 : index
    %c0_112 = arith.constant 0 : index
    %157 = vector.load %arg5[%c0_111, %c0_112] : memref<36x12xf32, #tpu.memory_space<vmem>>, vector<36x12xf32>
    %cst_113 = arith.constant dense<0.000000e+00> : vector<1x12xf32>
    %158 = tpu.matmul %156, %157, %cst_113 {dimension_numbers = #tpu.dot_dimension_numbers<[1], [0], [0], [1], [0, 0, 1, 1], [], []>} : vector<1x36xf32>, vector<36x12xf32>, vector<1x12xf32> -> vector<1x12xf32>
    %cst_114 = arith.constant 3.000000e+00 : f32
    %159 = vector.broadcast %cst_114 : f32 to vector<1x12xf32>
    %160 = arith.divf %159, %158 : vector<1x12xf32>
    %cst_115 = arith.constant 1.000000e+00 : f32
    %161 = vector.broadcast %cst_115 : f32 to vector<1x12xf32>
    %162 = arith.addf %160, %161 : vector<1x12xf32>
    %cst_116 = arith.constant 1.000000e+00 : f32
    %163 = vector.broadcast %cst_116 : f32 to vector<1x12xf32>
    %164 = arith.divf %163, %162 : vector<1x12xf32>
    %165 = arith.mulf %164, %160 : vector<1x12xf32>
    %166 = arith.mulf %165, %152 : vector<1x12xf32>
    %c0_117 = arith.constant 0 : index
    %c0_118 = arith.constant 0 : index
    %c0_119 = arith.constant 0 : index
    %167 = vector.load %arg32[%c0_117, %c0_118, %c0_119] : memref<1x1x12xf32, #tpu.memory_space<vmem>>, vector<1x1x12xf32>
    %168 = vector.shape_cast %167 : vector<1x1x12xf32> to vector<1x12xf32>
    %169 = vector.shape_cast %166 : vector<1x12xf32> to vector<1x1x12xf32>
    tpu.vector_store %arg32[%c0_117, %c0_118, %c0_119], %169 {strides = array<i32>} : memref<1x1x12xf32, #tpu.memory_space<vmem>>, vector<1x1x12xf32>,
    %cst_120 = arith.constant 9.99999993E-9 : f32
    %cst_121 = arith.constant 1.000000e+02 : f32
    %170 = vector.broadcast %cst_120 : f32 to vector<1x12xf32>
    %171 = arith.maximumf %170, %164 : vector<1x12xf32>
    %172 = vector.broadcast %cst_121 : f32 to vector<1x12xf32>
    %173 = arith.minimumf %172, %171 : vector<1x12xf32>
    %c0_122 = arith.constant 0 : index
    %c0_123 = arith.constant 0 : index
    %c0_124 = arith.constant 0 : index
    %174 = vector.load %arg33[%c0_122, %c0_123, %c0_124] : memref<1x1x12xf32, #tpu.memory_space<vmem>>, vector<1x1x12xf32>
    %175 = vector.shape_cast %174 : vector<1x1x12xf32> to vector<1x12xf32>
    %176 = vector.shape_cast %173 : vector<1x12xf32> to vector<1x1x12xf32>
    tpu.vector_store %arg33[%c0_122, %c0_123, %c0_124], %176 {strides = array<i32>} : memref<1x1x12xf32, #tpu.memory_space<vmem>>, vector<1x1x12xf32>,
    return
  }
  func.func @transform_0(%arg0: i32) -> (i32, i32, i32) {
    %c0_i32 = arith.constant 0 : i32
    %c0_i32_0 = arith.constant 0 : i32
    %c0_i32_1 = arith.constant 0 : i32
    return %arg0, %c0_i32, %c0_i32_0 : i32, i32, i32
  }
  func.func @transform_1(%arg0: i32) -> (i32, i32) {
    %c0_i32 = arith.constant 0 : i32
    %c0_i32_0 = arith.constant 0 : i32
    %c0_i32_1 = arith.constant 0 : i32
    return %c0_i32, %c0_i32_0 : i32, i32
  }
  func.func @transform_2(%arg0: i32) -> (i32, i32) {
    %c0_i32 = arith.constant 0 : i32
    %c0_i32_0 = arith.constant 0 : i32
    %c0_i32_1 = arith.constant 0 : i32
    return %c0_i32, %c0_i32_0 : i32, i32
  }
  func.func @transform_3(%arg0: i32) -> (i32, i32) {
    %c0_i32 = arith.constant 0 : i32
    %c0_i32_0 = arith.constant 0 : i32
    %c0_i32_1 = arith.constant 0 : i32
    return %c0_i32, %c0_i32_0 : i32, i32
  }
  func.func @transform_4(%arg0: i32) -> (i32, i32) {
    %c0_i32 = arith.constant 0 : i32
    %c0_i32_0 = arith.constant 0 : i32
    %c0_i32_1 = arith.constant 0 : i32
    return %c0_i32, %c0_i32_0 : i32, i32
  }
  func.func @transform_5(%arg0: i32) -> (i32, i32) {
    %c0_i32 = arith.constant 0 : i32
    %c0_i32_0 = arith.constant 0 : i32
    %c0_i32_1 = arith.constant 0 : i32
    return %c0_i32, %c0_i32_0 : i32, i32
  }
  func.func @transform_6(%arg0: i32) -> (i32, i32) {
    %c0_i32 = arith.constant 0 : i32
    %c0_i32_0 = arith.constant 0 : i32
    %c0_i32_1 = arith.constant 0 : i32
    return %c0_i32, %c0_i32_0 : i32, i32
  }
  func.func @transform_7(%arg0: i32) -> (i32, i32) {
    %c0_i32 = arith.constant 0 : i32
    %c0_i32_0 = arith.constant 0 : i32
    %c0_i32_1 = arith.constant 0 : i32
    return %c0_i32, %c0_i32_0 : i32, i32
  }
  func.func @transform_8(%arg0: i32) -> (i32, i32) {
    %c0_i32 = arith.constant 0 : i32
    %c0_i32_0 = arith.constant 0 : i32
    %c0_i32_1 = arith.constant 0 : i32
    return %c0_i32, %c0_i32_0 : i32, i32
  }
  func.func @transform_9(%arg0: i32) -> (i32, i32) {
    %c0_i32 = arith.constant 0 : i32
    %c0_i32_0 = arith.constant 0 : i32
    %c0_i32_1 = arith.constant 0 : i32
    return %c0_i32, %c0_i32_0 : i32, i32
  }
  func.func @transform_10(%arg0: i32) -> (i32, i32) {
    %c0_i32 = arith.constant 0 : i32
    %c0_i32_0 = arith.constant 0 : i32
    %c0_i32_1 = arith.constant 0 : i32
    return %c0_i32, %c0_i32_0 : i32, i32
  }
  func.func @transform_11(%arg0: i32) -> (i32, i32) {
    %c0_i32 = arith.constant 0 : i32
    %c0_i32_0 = arith.constant 0 : i32
    %c0_i32_1 = arith.constant 0 : i32
    return %c0_i32, %c0_i32_0 : i32, i32
  }
  func.func @transform_12(%arg0: i32) -> (i32, i32) {
    %c0_i32 = arith.constant 0 : i32
    %c0_i32_0 = arith.constant 0 : i32
    %c0_i32_1 = arith.constant 0 : i32
    return %c0_i32, %c0_i32_0 : i32, i32
  }
  func.func @transform_13(%arg0: i32) -> (i32, i32) {
    %c0_i32 = arith.constant 0 : i32
    %c0_i32_0 = arith.constant 0 : i32
    %c0_i32_1 = arith.constant 0 : i32
    return %c0_i32, %c0_i32_0 : i32, i32
  }
  func.func @transform_14(%arg0: i32) -> (i32, i32) {
    %c0_i32 = arith.constant 0 : i32
    %c0_i32_0 = arith.constant 0 : i32
    %c0_i32_1 = arith.constant 0 : i32
    return %c0_i32, %c0_i32_0 : i32, i32
  }
  func.func @transform_15(%arg0: i32) -> (i32, i32) {
    %c0_i32 = arith.constant 0 : i32
    %c0_i32_0 = arith.constant 0 : i32
    %c0_i32_1 = arith.constant 0 : i32
    return %c0_i32, %c0_i32_0 : i32, i32
  }
  func.func @transform_16(%arg0: i32) -> (i32, i32) {
    %c0_i32 = arith.constant 0 : i32
    %c0_i32_0 = arith.constant 0 : i32
    %c0_i32_1 = arith.constant 0 : i32
    return %c0_i32, %c0_i32_0 : i32, i32
  }
  func.func @transform_17(%arg0: i32) -> (i32, i32) {
    %c0_i32 = arith.constant 0 : i32
    %c0_i32_0 = arith.constant 0 : i32
    %c0_i32_1 = arith.constant 0 : i32
    return %c0_i32, %c0_i32_0 : i32, i32
  }
  func.func @transform_18(%arg0: i32) -> (i32, i32) {
    %c0_i32 = arith.constant 0 : i32
    %c0_i32_0 = arith.constant 0 : i32
    %c0_i32_1 = arith.constant 0 : i32
    return %c0_i32, %c0_i32_0 : i32, i32
  }
  func.func @transform_19(%arg0: i32) -> (i32, i32) {
    %c0_i32 = arith.constant 0 : i32
    %c0_i32_0 = arith.constant 0 : i32
    %c0_i32_1 = arith.constant 0 : i32
    return %c0_i32, %c0_i32_0 : i32, i32
  }
  func.func @transform_20(%arg0: i32) -> (i32, i32) {
    %c0_i32 = arith.constant 0 : i32
    %c0_i32_0 = arith.constant 0 : i32
    %c0_i32_1 = arith.constant 0 : i32
    return %c0_i32, %c0_i32_0 : i32, i32
  }
  func.func @transform_21(%arg0: i32) -> (i32, i32) {
    %c0_i32 = arith.constant 0 : i32
    %c0_i32_0 = arith.constant 0 : i32
    %c0_i32_1 = arith.constant 0 : i32
    return %c0_i32, %c0_i32_0 : i32, i32
  }
  func.func @transform_22(%arg0: i32) -> (i32, i32) {
    %c0_i32 = arith.constant 0 : i32
    %c0_i32_0 = arith.constant 0 : i32
    %c0_i32_1 = arith.constant 0 : i32
    return %c0_i32, %c0_i32_0 : i32, i32
  }
  func.func @transform_23(%arg0: i32) -> (i32, i32) {
    %c0_i32 = arith.constant 0 : i32
    %c0_i32_0 = arith.constant 0 : i32
    %c0_i32_1 = arith.constant 0 : i32
    return %c0_i32, %c0_i32_0 : i32, i32
  }
  func.func @transform_24(%arg0: i32) -> (i32, i32) {
    %c0_i32 = arith.constant 0 : i32
    %c0_i32_0 = arith.constant 0 : i32
    %c0_i32_1 = arith.constant 0 : i32
    return %c0_i32, %c0_i32_0 : i32, i32
  }
  func.func @transform_25(%arg0: i32) -> (i32, i32) {
    %c0_i32 = arith.constant 0 : i32
    %c0_i32_0 = arith.constant 0 : i32
    %c0_i32_1 = arith.constant 0 : i32
    return %c0_i32, %c0_i32_0 : i32, i32
  }
  func.func @transform_26(%arg0: i32) -> (i32, i32) {
    %c0_i32 = arith.constant 0 : i32
    %c0_i32_0 = arith.constant 0 : i32
    %c0_i32_1 = arith.constant 0 : i32
    return %c0_i32, %c0_i32_0 : i32, i32
  }
  func.func @transform_27(%arg0: i32) -> (i32, i32) {
    %c0_i32 = arith.constant 0 : i32
    %c0_i32_0 = arith.constant 0 : i32
    %c0_i32_1 = arith.constant 0 : i32
    return %c0_i32, %c0_i32_0 : i32, i32
  }
  func.func @transform_28(%arg0: i32) -> (i32, i32) {
    %c0_i32 = arith.constant 0 : i32
    %c0_i32_0 = arith.constant 0 : i32
    %c0_i32_1 = arith.constant 0 : i32
    return %c0_i32, %c0_i32_0 : i32, i32
  }
  func.func @transform_29(%arg0: i32) -> (i32, i32, i32) {
    %c0_i32 = arith.constant 0 : i32
    %c0_i32_0 = arith.constant 0 : i32
    %c0_i32_1 = arith.constant 0 : i32
    return %arg0, %c0_i32, %c0_i32_0 : i32, i32, i32
  }
  func.func @transform_30(%arg0: i32) -> (i32, i32, i32) {
    %c0_i32 = arith.constant 0 : i32
    %c0_i32_0 = arith.constant 0 : i32
    %c0_i32_1 = arith.constant 0 : i32
    return %arg0, %c0_i32, %c0_i32_0 : i32, i32, i32
  }
  func.func @transform_31(%arg0: i32) -> (i32, i32, i32) {
    %c0_i32 = arith.constant 0 : i32
    %c0_i32_0 = arith.constant 0 : i32
    %c0_i32_1 = arith.constant 0 : i32
    return %arg0, %c0_i32, %c0_i32_0 : i32, i32, i32
  }
  func.func @transform_32(%arg0: i32) -> (i32, i32, i32) {
    %c0_i32 = arith.constant 0 : i32
    %c0_i32_0 = arith.constant 0 : i32
    %c0_i32_1 = arith.constant 0 : i32
    return %arg0, %c0_i32, %c0_i32_0 : i32, i32, i32
  }
}

</mosaic_0001>

<bundles_post_ra>
// kernel: tile.9
= control target key start
LH: loop header
LB: loop body
LE: loop exit
PB: predicated region body
PF: predicated region fallthrough
CT: control target
= control target key end

     0   :  { %vm63_vm0 = vcmask 1047556   ;;  %vm65_vm1 = vcmask 97280   ;;  %s133_s30 = smov 12   ;;  %vm80_vm2 = vcmask 294080   ;;  %vm97_vm3 = vcmask 195680   ;;  %s200_s0 = inlined_call_operand.vmem [shape: f32[3,12,12], index: 0, kind: input, shape index: {}]   ;;  %s201_s1 = inlined_call_operand.vmem [shape: f32[36,12], index: 1, kind: output, shape index: {}]  }
   0x1   :  { %v120_v0 = vld [vmem:[%s200_s0 + $0x1c] sm:$0xf]  ;;  %v121_v1 = vld [vmem:[%s200_s0 + $0x18] sm:$0xf]  ;;  %v122_v2 = vld [vmem:[%s200_s0 + $0x14] sm:$0xf] }
   0x2   :  { %29 = vst [vmem:[#allocation0 + $0x38] sm:$0xf] %v120_v0  ;;  %34 = vst [vmem:[#allocation0 + $0x30] sm:$0xf] %v121_v1  ;;  %v123_v3 = vld [vmem:[%s200_s0 + $0x10] sm:$0xf] }
   0x3   :  { %39 = vst [vmem:[#allocation0 + $0x28] sm:$0xf] %v122_v2  ;;  %v124_v4 = vld [vmem:[%s200_s0 + $0xc] sm:$0xf]  ;;  %v125_v5 = vld [vmem:[%s200_s0 + $0x8] sm:$0xf] }
   0x4   :  { %44 = vst [vmem:[#allocation0 + $0x20] sm:$0xf] %v123_v3  ;;  %49 = vst [vmem:[#allocation0 + $0x18] sm:$0xf] %v124_v4  ;;  %v126_v6 = vld [vmem:[%s200_s0 + $0x4] sm:$0xf] }
   0x5   :  { %54 = vst [vmem:[#allocation0 + $0x10] sm:$0xf] %v125_v5  ;;  %v59_v7 = vld [vmem:[%s200_s0] sm:$0xf]  ;;  %58 = vst [vmem:[#allocation0 + $0x8] sm:$0xf] %v126_v6 }
   0x6   :  { %60 = vst [vmem:[#allocation0] sm:$0xf] %v59_v7  ;;  %v116_v8 = vld [vmem:[%s200_s0 + $0x2c] sm:$0xf]  ;;  %v117_v9 = vld [vmem:[%s200_s0 + $0x28] sm:$0xf] }
   0x7   :  { %9 = vst [vmem:[#allocation0 + $0x58] sm:$0xf] %v116_v8  ;;  %14 = vst [vmem:[#allocation0 + $0x50] sm:$0xf] %v117_v9  ;;  %v118_v10 = vld [vmem:[%s200_s0 + $0x24] sm:$0xf] }
   0x8   :  { %v119_v11 = vld [vmem:[%s200_s0 + $0x20] sm:$0xf]  ;;  %19 = vst [vmem:[#allocation0 + $0x48] sm:$0xf] %v118_v10  ;;  %s132_s0 = smov 24  }
   0x9   :  { %24 = vst [vmem:[#allocation0 + $0x40] sm:$0xf] %v119_v11 }
   0xb   :  { %v75_v12 = vld [vmem:[#allocation0 + $0x2] ss:$8 sm:$0xf0]   ;;  %v92_v13 = vld [vmem:[#allocation0 + $0x1] ss:$8 sm:$0xf0]  }
   0xc   :  { %v62_v18 = vld [vmem:[#allocation0] ss:$8 sm:$0xf0]  }
   0xd   :  { %v73_v14 = vld [vmem:[#allocation0 + $0x2] ss:$8 sm:$0xf]   ;;  %v61_v15 = vld [vmem:[#allocation0] ss:$8 sm:$0xf]  }
   0xe   :  { %v77_v16 = vsel %vm63_vm0, %v75_v12, %v73_v14  ;;  %v90_v17 = vld [vmem:[#allocation0 + $0x1] ss:$8 sm:$0xf]   ;;  %v64_v20 = vsel %vm63_vm0, %v62_v18, %v61_v15 }
   0xf   :  { %78 = vrot.lane.b32.xlu0 %v77_v16, %s132_s0  ;;  %v94_v19 = vsel %vm63_vm0, %v92_v13, %v90_v17  ;;  %66 = vst.msk [vmem:[%s201_s1] sm:$0xff] %vm65_vm1, %v64_v20  }
  0x10   :  { %95 = vrot.lane.b32.xlu1 %v94_v19, %s133_s30  ;;  %v83_v21 = vld [vmem:[#allocation0 + $0x42] ss:$8 sm:$0xf]   ;;  %v68_v22 = vld [vmem:[#allocation0 + $0x40] ss:$8 sm:$0xf]  }
  0x11   :  { %v100_v23 = vld [vmem:[#allocation0 + $0x41] ss:$8 sm:$0xf]   ;;  %127 = vst.msk [vmem:[%s201_s1 + $0x8] sm:$0xf] %vm65_vm1, %v68_v22  }
  0x13   :  { %84 = vrot.lane.b32.xlu0 %v83_v21, %s132_s0 }
  0x14   :  { %101 = vrot.lane.b32.xlu1 %v100_v23, %s133_s30 }
  0x81   :  { %v79_v24 = vpop.permute.xlu0 %78  }
  0x82   :  { %81 = vst.msk [vmem:[%s201_s1] sm:$0xff] %vm80_vm2, %v79_v24   ;;  %v96_v25 = vpop.permute.xlu1 %95  }
  0x83   :  { %98 = vst.msk [vmem:[%s201_s1] sm:$0xff] %vm97_vm3, %v96_v25  }
  0x85   :  { %v85_v26 = vpop.permute.xlu0 %84  }
  0x86   :  { %128 = vst.msk [vmem:[%s201_s1 + $0x8] sm:$0xf] %vm80_vm2, %v85_v26   ;;  %v102_v27 = vpop.permute.xlu1 %101  }
  0x87   :  { %129 = vst.msk [vmem:[%s201_s1 + $0x8] sm:$0xf] %vm97_vm3, %v102_v27  }

// kernel: ladder_encoder_forward.1
= control target key start
LH: loop header
LB: loop body
LE: loop exit
PB: predicated region body
PF: predicated region fallthrough
CT: control target
= control target key end

     0   :  { %s4367_s6 = smov 1   ;;  %s4368_s10 = smov 2   ;;  %s5101_s0 = inlined_call_operand.smem [shape: u32[33], index: -1, kind: input, shape index: {}] }
   0x1   :  { %s4412_s5 = sld [smem:[%s5101_s0]]   ;;  %s4369_s14 = smov 3  }
   0x2   :  { %s4417_s9 = sld [smem:[%s5101_s0 + %s4367_s6]]   ;;  %s4370_s18 = smov 4  }
   0x3   :  { %s4422_s13 = sld [smem:[%s5101_s0 + %s4368_s10]]   ;;  %s4371_s22 = smov 5  }
   0x4   :  { %s4427_s17 = sld [smem:[%s5101_s0 + %s4369_s14]]   ;;  %s4372_s26 = smov 6  }
   0x5   :  { %s4432_s21 = sld [smem:[%s5101_s0 + %s4370_s18]]   ;;  %s4373_s30 = smov 7  }
   0x6   :  { %s4437_s25 = sld [smem:[%s5101_s0 + %s4371_s22]]   ;;  %s4374_s4 = smov 8  }
   0x7   :  { %5120 = sst [smem:[#allocation10_spill]] %s4412_s5  ;;  %s4375_s10 = smov 9  }
   0x8   :  { %5121 = sst [smem:[#allocation11_spill]] %s4417_s9  ;;  %s4376_s15 = smov 10  }
   0x9   :  { %5122 = sst [smem:[#allocation12_spill]] %s4422_s13  ;;  %s4377_s20 = smov 11  }
   0xa   :  { %s4442_s29 = sld [smem:[%s5101_s0 + %s4372_s26]]   ;;  %s4378_s26 = smov 12  }
   0xb   :  { %5123 = sst [smem:[#allocation13_spill]] %s4432_s21  ;;  %s4379_s1 = smov 13  }
   0xc   :  { %5124 = sst [smem:[#allocation14_spill]] %s4437_s25  ;;  %s4380_s7 = smov 14  }
   0xd   :  { %s4447_s3 = sld [smem:[%s5101_s0 + %s4373_s30]]   ;;  %s4382_s22 = smov 16  }
   0xe   :  { %s4452_s8 = sld [smem:[%s5101_s0 + %s4374_s4]]   ;;  %s4383_s28 = smov 17  }
   0xf   :  { %s4457_s14 = sld [smem:[%s5101_s0 + %s4375_s10]]   ;;  %s4393_s16 = smov 27  }
  0x10   :  { %s4462_s19 = sld [smem:[%s5101_s0 + %s4376_s15]]   ;;  %s4381_s15 = smov 15  }
  0x11   :  { %s4467_s24 = sld [smem:[%s5101_s0 + %s4377_s20]]   ;;  %s4394_s23 = smov 29  }
  0x12   :  { %s4472_s30 = sld [smem:[%s5101_s0 + %s4378_s26]]   ;;  %s4396_s10 = smov 31  }
  0x13   :  { %5125 = sst [smem:[#allocation15_spill]] %s4447_s3 }
  0x14   :  { %5126 = sst [smem:[#allocation16_spill]] %s4452_s8 }
  0x15   :  { %5127 = sst [smem:[#allocation17_spill]] %s4457_s14 }
  0x16   :  { %s4477_s6 = sld [smem:[%s5101_s0 + %s4379_s1]]   ;;  %s4395_s1 = smov 30  }
  0x17   :  { %s4482_s12 = sld [smem:[%s5101_s0 + %s4380_s7]]   ;;  %s4384_s7 = smov 18  }
  0x18   :  { %s4487_s20 = sld [smem:[%s5101_s0 + %s4381_s15]]   ;;  %s4385_s15 = smov 19  }
  0x19   :  { %s4492_s27 = sld [smem:[%s5101_s0 + %s4382_s22]]   ;;  %s4386_s22 = smov 20  }
  0x1a   :  { %s4497_s4 = sld [smem:[%s5101_s0 + %s4383_s28]]   ;;  %s4387_s28 = smov 21  }
  0x1b   :  { %s4502_s25 = sld [smem:[%s5101_s0 + %s4384_s7]]   ;;  %s4388_s7 = smov 22  }
  0x1c   :  { %5128 = sst [smem:[#allocation18_spill]] %s4477_s6 }
  0x1d   :  { %5129 = sst [smem:[#allocation19_spill]] %s4482_s12 }
  0x1e   :  { %5130 = sst [smem:[#allocation20_spill]] %s4487_s20 }
  0x1f   :  { %5131 = sst [smem:[#allocation21_spill]] %s4492_s27 }
  0x20   :  { %5132 = sst [smem:[#allocation22_spill]] %s4497_s4 }
  0x21   :  { %5133 = sst [smem:[#allocation23_spill]] %s4502_s25 }
  0x22   :  { %s4507_s21 = sld [smem:[%s5101_s0 + %s4385_s15]]   ;;  %s4389_s15 = smov 23  }
  0x23   :  { %s4512_s27 = sld [smem:[%s5101_s0 + %s4386_s22]]   ;;  %s4390_s22 = smov 24  }
  0x24   :  { %s4517_s4 = sld [smem:[%s5101_s0 + %s4387_s28]]   ;;  %s4391_s28 = smov 25  }
  0x25   :  { %s4522_s25 = sld [smem:[%s5101_s0 + %s4388_s7]]   ;;  %s4392_s7 = smov 26  }
  0x26   :  { %s4560_s20 = sld [smem:[%s5101_s0 + %s4396_s10]]  }
  0x28   :  { %5134 = sst [smem:[#allocation24_spill]] %s4507_s21 }
  0x29   :  { %5135 = sst [smem:[#allocation25_spill]] %s4512_s27 }
  0x2a   :  { %5136 = sst [smem:[#allocation26_spill]] %s4517_s4 }
  0x2b   :  { %5137 = sst [smem:[#allocation27_spill]] %s4522_s25 }
  0x2c   :  { %s4527_s21 = sld [smem:[%s5101_s0 + %s4389_s15]]  }
  0x2d   :  { %s4532_s27 = sld [smem:[%s5101_s0 + %s4390_s22]]  }
  0x2e   :  { %s4537_s4 = sld [smem:[%s5101_s0 + %s4391_s28]]  }
  0x2f   :  { %s3488_s25 = sld [smem:[%s5101_s0 + %s4392_s7]]  }
  0x32   :  { %5138 = sst [smem:[#allocation28_spill]] %s4527_s21 }
  0x33   :  { %5139 = sst [smem:[#allocation29_spill]] %s4532_s27 }
  0x34   :  { %5140 = sst [smem:[#allocation30_spill]] %s4537_s4 }
  0x35   :  { %s4545_s21 = sld [smem:[%s5101_s0 + %s4393_s16]]   ;;  %s4397_s16 = smov 32   ;;  %v71_v0 = vstv %s3488_s25 }
  0x36   :  { %s4550_s27 = sld [smem:[%s5101_s0 + %s4394_s23]]   ;;  %s4398_s23 = smov 28   ;;  %72 = vst [vmem:[#allocation2] sm:$0x1] %v71_v0 }
  0x37   :  { %s4555_s4 = sld [smem:[%s5101_s0 + %s4395_s1]]  }
  0x38   :  { %s3490_s28 = sld [smem:[%s5101_s0 + %s4398_s23]]  }
  0x3b   :  { %5141 = sst [smem:[#allocation31_spill]] %s4545_s21 }
  0x3c   :  { %s4565_s21 = sld [smem:[%s5101_s0 + %s4397_s16]]  }
  0x3d   :  { %5142 = sst [smem:[#allocation32_spill]] %s4555_s4 }
  0x3e   :  { %v73_v1 = vstv %s3490_s28 }
  0x3f   :  { %74 = vst [vmem:[#allocation3] sm:$0x1] %v73_v1 }
  0x40   :  { %75 = vsyncpa [#allocation5], 0 }
  0x41   :  { %77 = vsyncpa [#allocation5 + $0x1], 0 }
  0x42   :  { %78 = vsyncpa [#allocation7], 0 }
  0x43   :  { %80 = vsyncpa [#allocation7 + $0x1], 0  ;;  %s4570_s1 = smov 0   ;;  %s4572_s2 = smov 0  }
  0x44   :  { %s4574_s10 = smov 0   ;;  %s4576_s7 = smov 0  }
  0x45 LB: > { %s5143_s13 = sld [smem:[#allocation12_spill]]  ;;  %s4591_s0 = sadd.s32 4294967295, %s4365_s7   ;;  %s4365_s7 = sphi %s4576_s7, %s5171_s7   ;;  %s4361_s10 = sphi %s4574_s10, %s5170_s10   ;;  %s4357_s2 = sphi %s4572_s2, %s5169_s2   ;;  %s4353_s1 = sphi %s4570_s1, %s5168_s1  }
  0x46   : > { %s5144_s9 = sld [smem:[#allocation11_spill]]  ;;  %s3496_s25 = sadd.s32 4294967294, %s4365_s7  }
  0x47   : > { %s5145_s8 = sld [smem:[#allocation16_spill]]  ;;  %s4595_s11 = sadd.s32 1, %s4365_s7  }
  0x48   : > { %s5146_s6 = sld [smem:[#allocation18_spill]]  ;;  %s759_s16 = sadd.s32 1, %s4361_s10 }
  0x49   : > { %s756_s15 = ssub.s32 %s4365_s7, %s4595_s11  ;;  %p769_p0 = scmp.ne.s32.totalorder %s4361_s10, %s4357_s2 }
  0x4a   : > { %p757_p1 = scmp.eq.s32.totalorder %s756_s15, 0  ;;  %p770_p2 = scmp.eq.s32.totalorder %s4591_s0, 1 }
  0x4b   : > { %p775_p3 = scmp.ne.s32.totalorder %s4357_s2, %s4353_s1  ;;  %p776_p4 = scmp.eq.s32.totalorder %s3496_s25, 1 }
  0x4c   : > { %s4606_s18 = scalar_select %p757_p1, %s4361_s10, %s759_s16  }
  0x4d   : > { %p4608_p5 = por %p770_p2, %p769_p0  ;;  %p4612_p6 = por %p776_p4, %p775_p3 }
  0x4e   : > { %p3499_p7 = scmp.ge.s32.totalorder %s4365_s7, 1  ;;  %p912_p8 = scmp.lt.s32.totalorder %s4365_s7, 3 }
  0x50   : > { %p913_p9 = pnand %p3499_p7, %p912_p8 }
  0x51   : > { %s5149_s5 = sld [smem:[#allocation10_spill]] (!%p913_p9)  ;;  %p1003_p10 = scmp.lt.s32.totalorder (!%p913_p9), %s4591_s0, 1 }
  0x52   : > { %916 = sbr.rel (%p913_p9) target bundleno = 3353 (0xd19), region = 136  ;;  %s5150_s3 = sld [smem:[#allocation15_spill]] (!%p913_p9) }
  0x53   : > { %s5151_s14 = sld [smem:[#allocation17_spill]] (!%p913_p9) }
  0x54   : > { %s5152_s12 = sld [smem:[#allocation19_spill]] (!%p913_p9) }
  0x55   : > { %s5153_s16 = sld [smem:[#allocation20_spill]] (!%p913_p9) }
  0x56   : > { %s5154_s15 = sld [smem:[#allocation22_spill]] (!%p913_p9) }
  0x57   : > { %v1027_v2 = vld [vmem:[%s4442_s29 + $0x8] sm:$0xff]  ;;  %v1026_v3 = vld [vmem:[%s4442_s29] sm:$0xff]  ;;  %s4622_s26 = scalar_select %p1003_p10, %s4591_s0, 1  ;;  %vm1035_vm0 = vcmask 130048   ;;  %v1132_v6 = vld [vmem:[%s5145_s8 + $0x18] sm:$0xff]  ;;  %vm1140_vm1 = vcmask 261120  }
  0x58   : > { %3778 = vmatprep.subr.mxu0 %v1027_v2  ;;  %v1131_v7 = vld [vmem:[%s5145_s8 + $0x10] sm:$0xff]  ;;  %3785 = vmatprep.subr.mxu1 %v1132_v6  ;;  %v1130_v8 = vld [vmem:[%s5145_s8 + $0x8] sm:$0xff]  ;;  %v1129_v9 = vld [vmem:[%s5145_s8] sm:$0xff]  ;;  %v4399_v25 = vmov 0.0   ;;  %vm4400_vm4 = vmmov 0   ;;  %vm1250_vm5 = vcmask 1043456  }
  0x59   : > { %3779 = vmatpush3.msra.mxu0 %v1027_v2  ;;  %s3630_s28 = sshll.u32 %s4622_s26, 4  ;;  %3786 = vmatpush3.msra.mxu1 %v1132_v6  ;;  %v3502_v10 = vld [vmem:[%s5150_s3] ss:$0 sm:$0xff]  ;;  %vm1234_vm8 = vcmask 97280   ;;  %v1456_v43 = vld [vmem:[%s4467_s24 + $0x18] sm:$0xff]  ;;  %v4661_v45 = vld [vmem:[%s5144_s9 + $0x8] sm:$0xff] }
  0x5a   : > { %3780 = vmatprep.subr.mxu0 %v1026_v3  ;;  %s1007_s25 = scalar_lea.vmem %s5149_s5, %s3630_s28  ;;  %3787 = vmatprep.subr.mxu1 %v1131_v7  ;;  %v3507_v26 = vld [vmem:[%s5151_s14] ss:$0 sm:$0xff]  ;;  %v1452_v44 = vld [vmem:[%s4462_s19 + $0x18] sm:$0xff]  ;;  %v4664_v46 = vld [vmem:[%s5143_s13 + $0x8] sm:$0xff]  ;;  %vm1857_vm14 = vcmask 293888   ;;  %s5155_s28 = sld [smem:[#allocation21_spill]] }
  0x5b   : > { %3781 = vmatpush3.msra.mxu0 %v1026_v3  ;;  %v1014_v4 = vld [vmem:[%s1007_s25] sm:$0xff]  ;;  %v1015_v5 = vld [vmem:[%s1007_s25 + $0x8] sm:$0xf]  ;;  %3788 = vmatpush3.msra.mxu1 %v1131_v7  ;;  %v1455_v47 = vld [vmem:[%s4467_s24 + $0x10] sm:$0xff]  ;;  %s5156_s25 = sld [smem:[#allocation23_spill]]  ;;  %s4402_s14 = smov [#allocation4]  }
  0x5c   : > { %3782 = vmatprep.mubr.msk.f32.mxu0 %vm1035_vm0, %v1014_v4  ;;  %3789 = vmatprep.subr.mxu1 %v1130_v8  ;;  %v4643_v40 = vld [vmem:[%s5144_s9] sm:$0xff]  ;;  %v1451_v48 = vld [vmem:[%s4462_s19 + $0x10] sm:$0xff]  ;;  %v1454_v51 = vld [vmem:[%s4467_s24 + $0x8] sm:$0xff]  ;;  %s5159_s3 = sld [smem:[#allocation26_spill]] }
  0x5d   : > { %3783 = vmatmul.mubr.msk.f32.vlgmr.msra.gmra.mxu0 %vm1035_vm0, %v1015_v5  ;;  %3790 = vmatpush3.msra.mxu1 %v1130_v8  ;;  %v4646_v41 = vld [vmem:[%s5143_s13] sm:$0xff]  ;;  %v4679_v49 = vld [vmem:[%s5144_s9 + $0x10] sm:$0xff]  ;;  %v1450_v52 = vld [vmem:[%s4462_s19 + $0x8] sm:$0xff]  ;;  %s5161_s5 = sld [smem:[#allocation27_spill]] }
  0x5e   : > { %3791 = vmatprep.subr.mxu1 %v1129_v9  ;;  %3796 = vmatprep.subr.mxu0 %v4399_v25  ;;  %v4682_v50 = vld [vmem:[%s5143_s13 + $0x10] sm:$0xff]  ;;  %v4697_v53 = vld [vmem:[%s5144_s9 + $0x18] sm:$0xff]  ;;  %v4713_v55 = vld [vmem:[%s5144_s9 + $0x20] sm:$0xf]  ;;  %s5166_s8 = sld [smem:[#allocation14_spill]] }
  0x5f   : > { %3792 = vmatpush3.msra.mxu1 %v1129_v9  ;;  %3800 = vmatprep.mubr.msk.f32.mxu0 %vm4400_vm4, %v4399_v25  ;;  %v4700_v54 = vld [vmem:[%s5143_s13 + $0x18] sm:$0xff]  ;;  %v4716_v56 = vld [vmem:[%s5143_s13 + $0x20] sm:$0xf]  ;;  %s5167_s4 = sld [smem:[#allocation32_spill]] }
  0x60   : > { %3815 = vmatprep.subr.mxu1 %v4399_v25  ;;  %v1453_v57 = vld [vmem:[%s4467_s24] sm:$0xff] }
  0x61   : > { %v1449_v58 = vld [vmem:[%s4462_s19] sm:$0xff] }
 0x11d   : > { %v3784_v11 = vpop.f32.mrf.mxu0 }
 0x11e   : > { %v1114_v12 = vadd.f32 %v3784_v11, %v3502_v10 }
 0x11f   : > { %v1108_v13 = vpop.f32.mrf.mxu0 }
 0x120   : > { %v1120_v14 = vmin.f32 %v1114_v12, 0.0  ;;  %v1109_v15 = vadd.f32 %v3502_v10, %v1108_v13  ;;  %vm1118_vm3 = vcmp.gt.f32.partialorder %v1114_v12, 0.0 }
 0x122   : > { %v1123_v16 = vmul.f32 1.442695, %v1120_v14  ;;  %v1119_v17 = vmin.f32 %v1109_v15, 0.0  ;;  %vm1117_vm2 = vcmp.gt.f32.partialorder %v1109_v15, 0.0 }
 0x124   : > { %4211 = vpow2.f32 %v1123_v16  ;;  %v1121_v18 = vmul.f32 1.442695, %v1119_v17  ;;  %v1711_v16 = vld [vmem:[%s5146_s6 + $0x10] sm:$0xff]  ;;  %v1710_v17 = vld [vmem:[%s5146_s6 + $0x8] sm:$0xff] }
 0x126   : > { %4213 = vpow2.f32 %v1121_v18  ;;  %v1709_v18 = vld [vmem:[%s5146_s6] sm:$0xff] }
 0x131   : > { %v4212_v19 = vpop.eup %4211 }
 0x132   : > { %v3506_v21 = vadd.f32 -1.0, %v4212_v19 }
 0x133   : > { %v4214_v20 = vpop.eup %4213 }
 0x134   : > { %v3505_v22 = vadd.f32 -1.0, %v4214_v20  ;;  %v1128_v24 = vsel %vm1118_vm3, %v1114_v12, %v3506_v21  ;;  %v3534_v21 = vld [vmem:[%s4472_s30] ss:$0 sm:$0xff] }
 0x136   : > { %v1127_v23 = vsel %vm1117_vm2, %v1109_v15, %v3505_v22  ;;  %v1712_v15 = vld [vmem:[%s5146_s6 + $0x18] sm:$0xff]  ;;  %s5165_s6 = sld [smem:[#allocation13_spill]] }
 0x137   : > { %3793 = vmatprep.mubr.msk.f32.mxu1 %vm1140_vm1, %v1127_v23 }
 0x138   : > { %3794 = vmatmul.mubr.msk.f32.vlgmr.msra.gmra.mxu1 %vm1140_vm1, %v1128_v24 }
 0x139   : > { %3819 = vmatprep.mubr.msk.f32.mxu1 %vm4400_vm4, %v4399_v25 }
 0x1f8   : > { %v3795_v27 = vpop.f32.mrf.mxu1 }
 0x1f9   : > { %v1219_v28 = vadd.f32 %v3795_v27, %v3507_v26 }
 0x1fa   : > { %v1213_v29 = vpop.f32.mrf.mxu1 }
 0x1fb   : > { %v1225_v30 = vmin.f32 %v1219_v28, 0.0  ;;  %v1214_v31 = vadd.f32 %v3507_v26, %v1213_v29  ;;  %vm1223_vm6 = vcmp.gt.f32.partialorder %v1219_v28, 0.0 }
 0x1fd   : > { %v1228_v32 = vmul.f32 1.442695, %v1225_v30  ;;  %v1224_v33 = vmin.f32 %v1214_v31, 0.0  ;;  %vm1222_vm7 = vcmp.gt.f32.partialorder %v1214_v31, 0.0 }
 0x1ff   : > { %4215 = vpow2.f32 %v1228_v32  ;;  %v1226_v34 = vmul.f32 1.442695, %v1224_v33 }
 0x201   : > { %4217 = vpow2.f32 %v1226_v34 }
 0x20c   : > { %v4216_v35 = vpop.eup %4215 }
 0x20d   : > { %v3511_v36 = vadd.f32 -1.0, %v4216_v35 }
 0x20e   : > { %v4218_v37 = vpop.eup %4217 }
 0x20f   : > { %v1233_v38 = vsel %vm1223_vm6, %v1219_v28, %v3511_v36  ;;  %v3510_v39 = vadd.f32 -1.0, %v4218_v37 }
 0x210   : > { %3797 = vmatpush3.msk.msra.mxu0 %vm1250_vm5, %v1233_v38  ;;  %3816 = vmatpush3.msk.msra.mxu1 %vm1250_vm5, %v1233_v38 }
 0x211   : > { %3798 = vmatprep.subr.mxu0 %v4399_v25  ;;  %3817 = vmatprep.subr.mxu1 %v4399_v25  ;;  %v1232_v42 = vsel %vm1222_vm7, %v1214_v31, %v3510_v39 }
 0x212   : > { %3799 = vmatpush3.msra.mxu0 %v1232_v42  ;;  %3818 = vmatpush3.msra.mxu1 %v1232_v42 }
 0x213   : > { %3801 = vmatmul.mubr.msk.f32.vlgmr.msra.gmra.mxu0 %vm1234_vm8, %v4643_v40  ;;  %3820 = vmatmul.mubr.msk.f32.vlgmr.msra.gmra.mxu1 %vm1234_vm8, %v4646_v41 }
 0x214   : > { %3803 = vmatprep.mubr.msk.f32.mxu0 %vm4400_vm4, %v4399_v25  ;;  %3822 = vmatprep.mubr.msk.f32.mxu1 %vm4400_vm4, %v4399_v25 }
 0x215   : > { %3834 = vmatprep.subr.mxu0 %v4399_v25  ;;  %3857 = vmatprep.subr.mxu1 %v4399_v25 }
 0x216   : > { %3835 = vmatpush3.msra.mxu0 %v1456_v43  ;;  %3858 = vmatpush3.msra.mxu1 %v1452_v44 }
 0x217   : > { %3804 = vmatmul.mubr.msk.f32.gmra.mxu0 %vm1234_vm8, %v4661_v45  ;;  %3823 = vmatmul.mubr.msk.f32.gmra.mxu1 %vm1234_vm8, %v4664_v46 }
 0x218   : > { %3806 = vmatprep.mubr.msk.f32.mxu0 %vm4400_vm4, %v4399_v25  ;;  %3825 = vmatprep.mubr.msk.f32.mxu1 %vm4400_vm4, %v4399_v25 }
 0x219   : > { %3836 = vmatprep.subr.mxu0 %v4399_v25  ;;  %3859 = vmatprep.subr.mxu1 %v4399_v25 }
 0x21a   : > { %3837 = vmatpush3.msra.mxu0 %v1455_v47  ;;  %3860 = vmatpush3.msra.mxu1 %v1451_v48 }
 0x21b   : > { %3807 = vmatmul.mubr.msk.f32.gmra.mxu0 %vm1234_vm8, %v4679_v49  ;;  %3826 = vmatmul.mubr.msk.f32.gmra.mxu1 %vm1234_vm8, %v4682_v50 }
 0x21c   : > { %3809 = vmatprep.mubr.msk.f32.mxu0 %vm4400_vm4, %v4399_v25  ;;  %3828 = vmatprep.mubr.msk.f32.mxu1 %vm4400_vm4, %v4399_v25 }
 0x21d   : > { %3838 = vmatprep.subr.mxu0 %v4399_v25  ;;  %3861 = vmatprep.subr.mxu1 %v4399_v25 }
 0x21e   : > { %3839 = vmatpush3.msra.mxu0 %v1454_v51  ;;  %3862 = vmatpush3.msra.mxu1 %v1450_v52 }
 0x21f   : > { %3810 = vmatmul.mubr.msk.f32.gmra.mxu0 %vm1234_vm8, %v4697_v53  ;;  %3829 = vmatmul.mubr.msk.f32.gmra.mxu1 %vm1234_vm8, %v4700_v54 }
 0x220   : > { %3812 = vmatprep.mubr.msk.f32.mxu0 %vm4400_vm4, %v4399_v25  ;;  %3831 = vmatprep.mubr.msk.f32.mxu1 %vm4400_vm4, %v4399_v25 }
 0x221   : > { %3840 = vmatprep.subr.mxu0 %v4399_v25  ;;  %3863 = vmatprep.subr.mxu1 %v4399_v25 }
 0x222   : > { %3841 = vmatpush3.msra.mxu0 %v1453_v57  ;;  %3864 = vmatpush3.msra.mxu1 %v1449_v58 }
 0x223   : > { %3813 = vmatmul.mubr.msk.f32.gmra.mxu0 %vm1234_vm8, %v4713_v55  ;;  %3832 = vmatmul.mubr.msk.f32.gmra.mxu1 %vm1234_vm8, %v4716_v56 }
 0x224   : > { %3842 = vmatprep.mubr.msk.f32.mxu0 %vm4400_vm4, %v4399_v25  ;;  %3865 = vmatprep.mubr.msk.f32.mxu1 %vm4400_vm4, %v4399_v25 }
 0x225   : > { %3880 = vmatprep.subr.mxu0 %v4399_v25 }
 0x2d3   : > { %v1320_v59 = vpop.f32.mrf.mxu0  ;;  %v1425_v60 = vpop.f32.mrf.mxu1 }
 0x2d4   : > { %3843 = vmatmul.mubr.msk.f32.vlgmr.msra.gmra.mxu0 %vm1140_vm1, %v1425_v60  ;;  %3866 = vmatmul.mubr.msk.f32.vlgmr.msra.gmra.mxu1 %vm1140_vm1, %v1320_v59 }
 0x2d5   : > { %v3802_v61 = vpop.f32.mrf.mxu0  ;;  %v3821_v62 = vpop.f32.mrf.mxu1  ;;  %3845 = vmatprep.mubr.msk.f32.mxu0 %vm4400_vm4, %v4399_v25  ;;  %3868 = vmatprep.mubr.msk.f32.mxu1 %vm4400_vm4, %v4399_v25 }
 0x2d6   : > { %3881 = vmatpush3.msra.mxu0 %v1712_v15 }
 0x2d7   : > { %v1325_v63 = vpop.f32.mrf.mxu0  ;;  %v1430_v0 = vpop.f32.mrf.mxu1  ;;  %3882 = vmatprep.subr.mxu0 %v4399_v25 }
 0x2d8   : > { %3846 = vmatmul.mubr.msk.f32.gmra.mxu0 %vm1140_vm1, %v1430_v0  ;;  %3869 = vmatmul.mubr.msk.f32.gmra.mxu1 %vm1140_vm1, %v1325_v63 }
 0x2d9   : > { %v3805_v1 = vpop.f32.mrf.mxu0  ;;  %v3824_v2 = vpop.f32.mrf.mxu1  ;;  %3848 = vmatprep.mubr.msk.f32.mxu0 %vm4400_vm4, %v4399_v25  ;;  %3871 = vmatprep.mubr.msk.f32.mxu1 %vm4400_vm4, %v4399_v25 }
 0x2da   : > { %3883 = vmatpush3.msra.mxu0 %v1711_v16 }
 0x2db   : > { %v1330_v3 = vpop.f32.mrf.mxu0  ;;  %v1435_v4 = vpop.f32.mrf.mxu1  ;;  %3884 = vmatprep.subr.mxu0 %v4399_v25 }
 0x2dc   : > { %3849 = vmatmul.mubr.msk.f32.gmra.mxu0 %vm1140_vm1, %v1435_v4  ;;  %3872 = vmatmul.mubr.msk.f32.gmra.mxu1 %vm1140_vm1, %v1330_v3 }
 0x2dd   : > { %v3808_v5 = vpop.f32.mrf.mxu0  ;;  %v3827_v6 = vpop.f32.mrf.mxu1  ;;  %3851 = vmatprep.mubr.msk.f32.mxu0 %vm4400_vm4, %v4399_v25  ;;  %3874 = vmatprep.mubr.msk.f32.mxu1 %vm4400_vm4, %v4399_v25 }
 0x2de   : > { %3885 = vmatpush3.msra.mxu0 %v1710_v17 }
 0x2df   : > { %v1335_v7 = vpop.f32.mrf.mxu0  ;;  %v1440_v8 = vpop.f32.mrf.mxu1  ;;  %3886 = vmatprep.subr.mxu0 %v4399_v25 }
 0x2e0   : > { %3852 = vmatmul.mubr.msk.f32.gmra.mxu0 %vm1140_vm1, %v1440_v8  ;;  %3875 = vmatmul.mubr.msk.f32.gmra.mxu1 %vm1140_vm1, %v1335_v7 }
 0x2e1   : > { %v3811_v9 = vpop.f32.mrf.mxu0  ;;  %v3830_v10 = vpop.f32.mrf.mxu1  ;;  %3854 = vmatprep.mubr.msk.f32.mxu0 %vm4400_vm4, %v4399_v25  ;;  %3877 = vmatprep.mubr.msk.f32.mxu1 %vm4400_vm4, %v4399_v25 }
 0x2e2   : > { %3887 = vmatpush3.msra.mxu0 %v1709_v18 }
 0x2e3   : > { %v1340_v11 = vpop.f32.mrf.mxu0  ;;  %v1445_v12 = vpop.f32.mrf.mxu1 }
 0x2e4   : > { %3855 = vmatmul.mubr.msk.f32.gmra.mxu0 %vm1140_vm1, %v1445_v12  ;;  %3878 = vmatmul.mubr.msk.f32.gmra.mxu1 %vm1140_vm1, %v1340_v11 }
 0x2e5   : > { %v3814_v13 = vpop.f32.mrf.mxu0  ;;  %v3833_v14 = vpop.f32.mrf.mxu1  ;;  %3888 = vmatprep.mubr.msk.f32.mxu0 %vm4400_vm4, %v4399_v25 }
 0x394   : > { %v1538_v19 = vpop.f32.mrf.mxu0  ;;  %v1643_v20 = vpop.f32.mrf.mxu1 }
 0x395   : > { %v1644_v22 = vadd.f32 %v1643_v20, %v1538_v19 }
 0x396   : > { %v3844_v23 = vpop.f32.mrf.mxu0  ;;  %v3867_v24 = vpop.f32.mrf.mxu1 }
 0x397   : > { %v1674_v26 = vadd.f32 %v3534_v21, %v1644_v22  ;;  %v1855_v22 = vld [vmem:[%s4427_s17] sm:$0xff] }
 0x398   : > { %v1543_v27 = vpop.f32.mrf.mxu0  ;;  %v1648_v28 = vpop.f32.mrf.mxu1  ;;  %3913 = vmatprep.mubr.msk.f32.mxu1 %vm1857_vm14, %v1855_v22  ;;  %v3554_v22 = vld [vmem:[%s5155_s28] ss:$0 sm:$0xff]  ;;  %s5157_s28 = sld [smem:[#allocation25_spill]] }
 0x399   : > { %v1684_v29 = vmin.f32 %v1674_v26, 0.0  ;;  %v1649_v30 = vadd.f32 %v1648_v28, %v1543_v27  ;;  %vm1679_vm9 = vcmp.gt.f32.partialorder %v1674_v26, 0.0 }
 0x39a   : > { %v3847_v31 = vpop.f32.mrf.mxu0  ;;  %v3870_v32 = vpop.f32.mrf.mxu1 }
 0x39b   : > { %v1689_v33 = vmul.f32 1.442695, %v1684_v29  ;;  %v1675_v34 = vadd.f32 %v3534_v21, %v1649_v30  ;;  %v3540_v29 = vld [vmem:[%s5152_s12] ss:$0 sm:$0xff] }
 0x39c   : > { %v1548_v35 = vpop.f32.mrf.mxu0  ;;  %v1653_v36 = vpop.f32.mrf.mxu1 }
 0x39d   : > { %4219 = vpow2.f32 %v1689_v33  ;;  %v1685_v37 = vmin.f32 %v1675_v34, 0.0  ;;  %v1654_v38 = vadd.f32 %v1653_v36, %v1548_v35  ;;  %vm1680_vm10 = vcmp.gt.f32.partialorder %v1675_v34, 0.0 }
 0x39e   : > { %v3850_v39 = vpop.f32.mrf.mxu0  ;;  %v3873_v42 = vpop.f32.mrf.mxu1 }
 0x39f   : > { %v1691_v43 = vmul.f32 1.442695, %v1685_v37  ;;  %v1676_v44 = vadd.f32 %v3534_v21, %v1654_v38 }
 0x3a0   : > { %v1553_v47 = vpop.f32.mrf.mxu0  ;;  %v1658_v48 = vpop.f32.mrf.mxu1 }
 0x3a1   : > { %4221 = vpow2.f32 %v1691_v43  ;;  %v1686_v51 = vmin.f32 %v1676_v44, 0.0  ;;  %v1659_v52 = vadd.f32 %v1658_v48, %v1553_v47  ;;  %vm1681_vm11 = vcmp.gt.f32.partialorder %v1676_v44, 0.0 }
 0x3a2   : > { %v3853_v57 = vpop.f32.mrf.mxu0  ;;  %v3876_v58 = vpop.f32.mrf.mxu1 }
 0x3a3   : > { %v1693_v59 = vmul.f32 1.442695, %v1686_v51  ;;  %v1677_v60 = vadd.f32 %v3534_v21, %v1659_v52 }
 0x3a4   : > { %v1558_v61 = vpop.f32.mrf.mxu0  ;;  %v1663_v62 = vpop.f32.mrf.mxu1 }
 0x3a5   : > { %4223 = vpow2.f32 %v1693_v59  ;;  %v1687_v63 = vmin.f32 %v1677_v60, 0.0  ;;  %v1664_v0 = vadd.f32 %v1663_v62, %v1558_v61  ;;  %vm1682_vm12 = vcmp.gt.f32.partialorder %v1677_v60, 0.0 }
 0x3a6   : > { %v3856_v1 = vpop.f32.mrf.mxu0  ;;  %v3879_v2 = vpop.f32.mrf.mxu1 }
 0x3a7   : > { %v1695_v3 = vmul.f32 1.442695, %v1687_v63  ;;  %v1678_v4 = vadd.f32 %v3534_v21, %v1664_v0 }
 0x3a9   : > { %4225 = vpow2.f32 %v1695_v3  ;;  %v1688_v5 = vmin.f32 %v1678_v4, 0.0  ;;  %vm1683_vm13 = vcmp.gt.f32.partialorder %v1678_v4, 0.0 }
 0x3aa   : > { %v4220_v6 = vpop.eup %4219 }
 0x3ab   : > { %v3535_v7 = vadd.f32 -1.0, %v4220_v6  ;;  %v1697_v8 = vmul.f32 1.442695, %v1688_v5 }
 0x3ad   : > { %v1704_v9 = vsel %vm1679_vm9, %v1674_v26, %v3535_v7  ;;  %4227 = vpow2.f32 %v1697_v8 }
 0x3ae   : > { %v4222_v10 = vpop.eup %4221  ;;  %3889 = vmatmul.mubr.msk.f32.vlgmr.msra.gmra.mxu0 %vm1140_vm1, %v1704_v9 }
 0x3af   : > { %3891 = vmatprep.mubr.msk.f32.mxu0 %vm4400_vm4, %v4399_v25  ;;  %v3536_v11 = vadd.f32 -1.0, %v4222_v10 }
 0x3b1   : > { %v1705_v12 = vsel %vm1680_vm10, %v1675_v34, %v3536_v11  ;;  %v1856_v11 = vld [vmem:[%s4427_s17 + $0x8] sm:$0xf] }
 0x3b2   : > { %v4224_v13 = vpop.eup %4223  ;;  %3892 = vmatmul.mubr.msk.f32.gmra.mxu0 %vm1140_vm1, %v1705_v12  ;;  %v1945_v12 = vld [vmem:[%s5153_s16 + $0x18] sm:$0xff] }
 0x3b3   : > { %3894 = vmatprep.mubr.msk.f32.mxu0 %vm4400_vm4, %v4399_v25  ;;  %v3537_v14 = vadd.f32 -1.0, %v4224_v13  ;;  %v1944_v13 = vld [vmem:[%s5153_s16 + $0x10] sm:$0xff] }
 0x3b5   : > { %v1706_v15 = vsel %vm1681_vm11, %v1676_v44, %v3537_v14  ;;  %v1943_v14 = vld [vmem:[%s5153_s16 + $0x8] sm:$0xff] }
 0x3b6   : > { %v4226_v16 = vpop.eup %4225  ;;  %3895 = vmatmul.mubr.msk.f32.gmra.mxu0 %vm1140_vm1, %v1706_v15  ;;  %v1942_v15 = vld [vmem:[%s5153_s16] sm:$0xff] }
 0x3b7   : > { %3897 = vmatprep.mubr.msk.f32.mxu0 %vm4400_vm4, %v4399_v25  ;;  %v3538_v17 = vadd.f32 -1.0, %v4226_v16 }
 0x3b9   : > { %v1707_v18 = vsel %vm1682_vm12, %v1677_v60, %v3538_v17 }
 0x3ba   : > { %v4228_v19 = vpop.eup %4227  ;;  %3898 = vmatmul.mubr.msk.f32.gmra.mxu0 %vm1140_vm1, %v1707_v18  ;;  %v2049_v18 = vld [vmem:[%s5154_s15 + $0x18] sm:$0xff] }
 0x3bb   : > { %3900 = vmatprep.mubr.msk.f32.mxu0 %vm4400_vm4, %v4399_v25  ;;  %v3539_v20 = vadd.f32 -1.0, %v4228_v19  ;;  %3927 = vmatprep.subr.mxu0 %v2049_v18  ;;  %v2048_v19 = vld [vmem:[%s5154_s15 + $0x10] sm:$0xff] }
 0x3bc   : > { %3928 = vmatpush3.msra.mxu0 %v2049_v18 }
 0x3bd   : > { %v1708_v21 = vsel %vm1683_vm13, %v1678_v4, %v3539_v20  ;;  %3929 = vmatprep.subr.mxu0 %v2048_v19  ;;  %v2047_v20 = vld [vmem:[%s5154_s15 + $0x8] sm:$0xff] }
 0x3be   : > { %3901 = vmatmul.mubr.msk.f32.gmra.mxu0 %vm1140_vm1, %v1708_v21  ;;  %v2046_v21 = vld [vmem:[%s5154_s15] sm:$0xff]  ;;  %s4279_s15 = sshll.u32 %s4402_s14, 4  ;;  %s4280_s15 = int_to_ptr.vmem [resolvable:$false] %s4279_s15 }
 0x3bf   : > { %3930 = vmatpush3.msra.mxu0 %v2048_v19  ;;  %s4281_s16 = scalar_lea.vmem %s4280_s15, 32 }
 0x3c0   : > { %3931 = vmatprep.subr.mxu0 %v2047_v20 }
 0x3c1   : > { %3932 = vmatpush3.msra.mxu0 %v2047_v20 }
 0x3c2   : > { %3933 = vmatprep.subr.mxu0 %v2046_v21 }
 0x3c3   : > { %3934 = vmatpush3.msra.mxu0 %v2046_v21 }
 0x3c4   : > { %3938 = vmatprep.subr.mxu0 %v4399_v25 }
 0x46e   : > { %v1801_v23 = vpop.f32.mrf.mxu0 }
 0x46f   : > { %v1802_v37 = vadd.f32 %v3540_v29, %v1801_v23 }
 0x470   : > { %v3890_v24 = vpop.f32.mrf.mxu0 }
 0x471   : > { %v1830_v51 = vmin.f32 %v1802_v37, 0.0  ;;  %vm1825_vm6 = vcmp.gt.f32.partialorder %v1802_v37, 0.0 }
 0x472   : > { %v1806_v26 = vpop.f32.mrf.mxu0 }
 0x473   : > { %v1807_v33 = vadd.f32 %v3540_v29, %v1806_v26  ;;  %v1835_v59 = vmul.f32 1.442695, %v1830_v51 }
 0x474   : > { %v3893_v27 = vpop.f32.mrf.mxu0 }
 0x475   : > { %v1831_v42 = vmin.f32 %v1807_v33, 0.0  ;;  %vm1826_vm3 = vcmp.gt.f32.partialorder %v1807_v33, 0.0 }
 0x476   : > { %v1811_v28 = vpop.f32.mrf.mxu0 }
 0x477   : > { %v1812_v30 = vadd.f32 %v3540_v29, %v1811_v28  ;;  %v1837_v57 = vmul.f32 1.442695, %v1831_v42 }
 0x478   : > { %v3896_v31 = vpop.f32.mrf.mxu0 }
 0x479   : > { %v1832_v35 = vmin.f32 %v1812_v30, 0.0  ;;  %vm1827_vm2 = vcmp.gt.f32.partialorder %v1812_v30, 0.0 }
 0x47a   : > { %v1816_v32 = vpop.f32.mrf.mxu0 }
 0x47b   : > { %v1817_v34 = vadd.f32 %v3540_v29, %v1816_v32  ;;  %v1839_v47 = vmul.f32 1.442695, %v1832_v35 }
 0x47c   : > { %v3899_v36 = vpop.f32.mrf.mxu0 }
 0x47d   : > { %v1833_v38 = vmin.f32 %v1817_v34, 0.0  ;;  %vm1828_vm0 = vcmp.gt.f32.partialorder %v1817_v34, 0.0 }
 0x47e   : > { %v1821_v39 = vpop.f32.mrf.mxu0 }
 0x47f   : > { %v1841_v43 = vmul.f32 1.442695, %v1833_v38  ;;  %v1822_v44 = vadd.f32 %v3540_v29, %v1821_v39  ;;  %v3559_v38 = vld [vmem:[%s5156_s25] ss:$0 sm:$0xff]  ;;  %s5158_s25 = sld [smem:[#allocation24_spill]] }
 0x480   : > { %v3902_v48 = vpop.f32.mrf.mxu0 }
 0x481   : > { %v1834_v52 = vmin.f32 %v1822_v44, 0.0  ;;  %4229 = vpow2.f32 %v1841_v43  ;;  %vm1829_vm15 = vcmp.gt.f32.partialorder %v1822_v44, 0.0 }
 0x482   : > { %4231 = vpow2.f32 %v1839_v47 }
 0x483   : > { %v1843_v58 = vmul.f32 1.442695, %v1834_v52 }
 0x485   : > { %4233 = vpow2.f32 %v1843_v58 }
 0x486   : > { %4235 = vpow2.f32 %v1837_v57 }
 0x487   : > { %4237 = vpow2.f32 %v1835_v59 }
 0x48e   : > { %v4230_v60 = vpop.eup %4229 }
 0x48f   : > { %v4232_v61 = vpop.eup %4231  ;;  %v3549_v0 = vadd.f32 -1.0, %v4230_v60 }
 0x490   : > { %v3548_v3 = vadd.f32 -1.0, %v4232_v61 }
 0x491   : > { %v4789_v5 = vsel %vm1828_vm0, %v1817_v34, %v3549_v0  ;;  %v2554_v0 = vld [vmem:[%s5159_s3 + $0x18] sm:$0xff] }
 0x492   : > { %v4234_v62 = vpop.eup %4233  ;;  %v4793_v7 = vsel %vm1827_vm2, %v1812_v30, %v3548_v3 }
 0x493   : > { %v3550_v63 = vadd.f32 -1.0, %v4234_v62  ;;  %v4236_v1 = vpop.eup %4235 }
 0x494   : > { %v4238_v4 = vpop.eup %4237  ;;  %v3547_v6 = vadd.f32 -1.0, %v4236_v1 }
 0x495   : > { %v4783_v2 = vsel %vm1829_vm15, %v1822_v44, %v3550_v63  ;;  %v3546_v8 = vadd.f32 -1.0, %v4238_v4  ;;  %v2340_v63 = vld [vmem:[%s5157_s28 + $0x18] sm:$0xff]  ;;  %v2553_v4 = vld [vmem:[%s5159_s3 + $0x10] sm:$0xff] }
 0x496   : > { %3903 = vmatprep.subr.msk.mxu1 %vm1250_vm5, %v4783_v2  ;;  %v4797_v9 = vsel %vm1826_vm3, %v1807_v33, %v3547_v6 }
 0x497   : > { %3904 = vmatpush3.msk.msra.mxu1 %vm1250_vm5, %v4783_v2  ;;  %v4801_v10 = vsel %vm1825_vm6, %v1802_v37, %v3546_v8 }
 0x498   : > { %3905 = vmatprep.subr.mxu1 %v4789_v5 }
 0x499   : > { %3906 = vmatpush3.msra.mxu1 %v4789_v5 }
 0x49a   : > { %3907 = vmatprep.subr.mxu1 %v4793_v7 }
 0x49b   : > { %3908 = vmatpush3.msra.mxu1 %v4793_v7 }
 0x49c   : > { %3909 = vmatprep.subr.mxu1 %v4797_v9 }
 0x49d   : > { %3910 = vmatpush3.msra.mxu1 %v4797_v9 }
 0x49e   : > { %3911 = vmatprep.subr.mxu1 %v4801_v10 }
 0x49f   : > { %3912 = vmatpush3.msra.mxu1 %v4801_v10 }
 0x4a0   : > { %3914 = vmatmul.mubr.msk.f32.vlgmr.msra.gmra.mxu1 %vm1857_vm14, %v1856_v11  ;;  %3916 = vmatprep.subr.mxu1 %v1945_v12  ;;  %v2552_v11 = vld [vmem:[%s5159_s3 + $0x8] sm:$0xff] }
 0x4a1   : > { %3917 = vmatpush3.msra.mxu1 %v1945_v12 }
 0x4a2   : > { %3918 = vmatprep.subr.mxu1 %v1944_v13 }
 0x4a3   : > { %3919 = vmatpush3.msra.mxu1 %v1944_v13 }
 0x4a4   : > { %3920 = vmatprep.subr.mxu1 %v1943_v14 }
 0x4a5   : > { %3921 = vmatpush3.msra.mxu1 %v1943_v14  ;;  %v2551_v14 = vld [vmem:[%s5159_s3] sm:$0xff]  ;;  %s5160_s3 = sld [smem:[#allocation28_spill]] }
 0x4a6   : > { %3922 = vmatprep.subr.mxu1 %v1942_v15 }
 0x4a7   : > { %3923 = vmatpush3.msra.mxu1 %v1942_v15 }
 0x4a8   : > { %4127 = vmatprep.subr.mxu1 %v4399_v25 }
 0x560   : > { %v3915_v16 = vpop.f32.mrf.mxu1 }
 0x562   : > { %v1933_v17 = vpop.f32.mrf.mxu1 }
 0x563   : > { %3924 = vmatprep.mubr.msk.f32.mxu1 %vm1140_vm1, %v1933_v17 }
 0x564   : > { %3925 = vmatmul.mubr.msk.f32.vlgmr.msra.gmra.mxu1 %vm1140_vm1, %v3915_v16 }
 0x565   : > { %3945 = vmatprep.mubr.msk.f32.mxu1 %vm4400_vm4, %v4399_v25 }
 0x624   : > { %v3926_v23 = vpop.f32.mrf.mxu1 }
 0x625   : > { %v2031_v24 = vadd.f32 %v3926_v23, %v3554_v22 }
 0x626   : > { %v2025_v26 = vpop.f32.mrf.mxu1 }
 0x627   : > { %v2037_v27 = vmin.f32 %v2031_v24, 0.0  ;;  %v2026_v28 = vadd.f32 %v3554_v22, %v2025_v26  ;;  %vm2035_vm9 = vcmp.gt.f32.partialorder %v2031_v24, 0.0 }
 0x629   : > { %v2040_v29 = vmul.f32 1.442695, %v2037_v27  ;;  %v2036_v30 = vmin.f32 %v2026_v28, 0.0  ;;  %vm2034_vm7 = vcmp.gt.f32.partialorder %v2026_v28, 0.0 }
 0x62b   : > { %4239 = vpow2.f32 %v2040_v29  ;;  %v2038_v31 = vmul.f32 1.442695, %v2036_v30 }
 0x62d   : > { %4241 = vpow2.f32 %v2038_v31 }
 0x638   : > { %v4240_v32 = vpop.eup %4239 }
 0x639   : > { %v3558_v34 = vadd.f32 -1.0, %v4240_v32 }
 0x63a   : > { %v4242_v33 = vpop.eup %4241 }
 0x63b   : > { %v3557_v35 = vadd.f32 -1.0, %v4242_v33  ;;  %v2045_v37 = vsel %vm2035_vm9, %v2031_v24, %v3558_v34 }
 0x63d   : > { %v2044_v36 = vsel %vm2034_vm7, %v2026_v28, %v3557_v35 }
 0x63e   : > { %3935 = vmatprep.mubr.msk.f32.mxu0 %vm1140_vm1, %v2044_v36 }
 0x63f   : > { %3936 = vmatmul.mubr.msk.f32.vlgmr.msra.gmra.mxu0 %vm1140_vm1, %v2045_v37 }
 0x640   : > { %3942 = vmatprep.mubr.msk.f32.mxu0 %vm4400_vm4, %v4399_v25 }
 0x6ff   : > { %v3937_v39 = vpop.f32.mrf.mxu0 }
 0x700   : > { %v2135_v42 = vadd.f32 %v3937_v39, %v3559_v38 }
 0x701   : > { %v2129_v43 = vpop.f32.mrf.mxu0 }
 0x702   : > { %v2141_v44 = vmin.f32 %v2135_v42, 0.0  ;;  %v2130_v47 = vadd.f32 %v3559_v38, %v2129_v43  ;;  %vm2139_vm10 = vcmp.gt.f32.partialorder %v2135_v42, 0.0 }
 0x704   : > { %v2144_v48 = vmul.f32 1.442695, %v2141_v44  ;;  %v2140_v51 = vmin.f32 %v2130_v47, 0.0  ;;  %vm2138_vm11 = vcmp.gt.f32.partialorder %v2130_v47, 0.0 }
 0x706   : > { %4243 = vpow2.f32 %v2144_v48  ;;  %v2142_v52 = vmul.f32 1.442695, %v2140_v51 }
 0x708   : > { %4245 = vpow2.f32 %v2142_v52 }
 0x713   : > { %v4244_v57 = vpop.eup %4243 }
 0x714   : > { %v3563_v58 = vadd.f32 -1.0, %v4244_v57 }
 0x715   : > { %v4246_v59 = vpop.eup %4245 }
 0x716   : > { %v2149_v60 = vsel %vm2139_vm10, %v2135_v42, %v3563_v58  ;;  %v3562_v61 = vadd.f32 -1.0, %v4246_v59  ;;  %v3591_v58 = vld [vmem:[%s5161_s5] ss:$0 sm:$0xff]  ;;  %s5162_s5 = sld [smem:[#allocation29_spill]] }
 0x717   : > { %3939 = vmatpush3.msk.msra.mxu0 %vm1250_vm5, %v2149_v60  ;;  %4129 = vmatpush3.msk.msra.mxu1 %vm1250_vm5, %v2149_v60 }
 0x718   : > { %3940 = vmatprep.subr.mxu0 %v4399_v25  ;;  %4128 = vmatprep.subr.mxu1 %v4399_v25  ;;  %v2148_v62 = vsel %vm2138_vm11, %v2130_v47, %v3562_v61 }
 0x719   : > { %3941 = vmatpush3.msra.mxu0 %v2148_v62  ;;  %4130 = vmatpush3.msra.mxu1 %v2148_v62 }
 0x71a   : > { %3943 = vmatmul.mubr.msk.f32.vlgmr.msra.gmra.mxu0 %vm1234_vm8, %v4643_v40  ;;  %3957 = vmatprep.subr.mxu0 %v4399_v25  ;;  %v2336_v40 = vld [vmem:[%s5158_s25 + $0x18] sm:$0xff] }
 0x71b   : > { %3958 = vmatpush3.msk.msra.mxu0 %vm1250_vm5, %v2149_v60  ;;  %3961 = vmatprep.mubr.msk.f32.mxu0 %vm4400_vm4, %v4399_v25 }
 0x71c   : > { %3959 = vmatprep.subr.mxu0 %v4399_v25  ;;  %3946 = vmatmul.mubr.msk.f32.vlgmr.msra.gmra.mxu1 %vm1234_vm8, %v4661_v45  ;;  %v2334_v45 = vld [vmem:[%s5158_s25 + $0x8] sm:$0xff] }
 0x71d   : > { %3960 = vmatpush3.msra.mxu0 %v2148_v62  ;;  %3948 = vmatprep.mubr.msk.f32.mxu1 %vm4400_vm4, %v4399_v25 }
 0x71e   : > { %3962 = vmatmul.mubr.msk.f32.vlgmr.msra.gmra.mxu0 %vm1234_vm8, %v4646_v41  ;;  %3976 = vmatprep.subr.mxu1 %v4399_v25  ;;  %v2335_v41 = vld [vmem:[%s5158_s25 + $0x10] sm:$0xff] }
 0x71f   : > { %3964 = vmatprep.mubr.msk.f32.mxu0 %vm4400_vm4, %v4399_v25  ;;  %3977 = vmatpush3.msra.mxu1 %v2340_v63 }
 0x720   : > { %3949 = vmatmul.mubr.msk.f32.gmra.mxu1 %vm1234_vm8, %v4679_v49  ;;  %3978 = vmatprep.subr.mxu1 %v4399_v25  ;;  %v2333_v49 = vld [vmem:[%s5158_s25] sm:$0xff] }
 0x721   : > { %3951 = vmatprep.mubr.msk.f32.mxu1 %vm4400_vm4, %v4399_v25  ;;  %3999 = vmatprep.subr.mxu0 %v4399_v25 }
 0x722   : > { %3965 = vmatmul.mubr.msk.f32.gmra.mxu0 %vm1234_vm8, %v4664_v46  ;;  %v2339_v46 = vld [vmem:[%s5157_s28 + $0x10] sm:$0xff] }
 0x723   : > { %3967 = vmatprep.mubr.msk.f32.mxu0 %vm4400_vm4, %v4399_v25  ;;  %4000 = vmatpush3.msra.mxu0 %v2336_v40 }
 0x724   : > { %3952 = vmatmul.mubr.msk.f32.gmra.mxu1 %vm1234_vm8, %v4697_v53  ;;  %4001 = vmatprep.subr.mxu0 %v4399_v25  ;;  %v2337_v53 = vld [vmem:[%s5157_s28] sm:$0xff] }
 0x725   : > { %3954 = vmatprep.mubr.msk.f32.mxu1 %vm4400_vm4, %v4399_v25  ;;  %4002 = vmatpush3.msra.mxu0 %v2335_v41 }
 0x726   : > { %3968 = vmatmul.mubr.msk.f32.gmra.mxu0 %vm1234_vm8, %v4682_v50  ;;  %4003 = vmatprep.subr.mxu0 %v4399_v25  ;;  %v2338_v50 = vld [vmem:[%s5157_s28 + $0x8] sm:$0xff] }
 0x727   : > { %3970 = vmatprep.mubr.msk.f32.mxu0 %vm4400_vm4, %v4399_v25  ;;  %4004 = vmatpush3.msra.mxu0 %v2334_v45 }
 0x728   : > { %3955 = vmatmul.mubr.msk.f32.gmra.mxu1 %vm1234_vm8, %v4713_v55  ;;  %4005 = vmatprep.subr.mxu0 %v4399_v25 }
 0x729   : > { %3984 = vmatprep.mubr.msk.f32.mxu1 %vm4400_vm4, %v4399_v25  ;;  %3979 = vmatpush3.msra.mxu1 %v2339_v46 }
 0x72a   : > { %3971 = vmatmul.mubr.msk.f32.gmra.mxu0 %vm1234_vm8, %v4700_v54  ;;  %3980 = vmatprep.subr.mxu1 %v4399_v25 }
 0x72b   : > { %3973 = vmatprep.mubr.msk.f32.mxu0 %vm4400_vm4, %v4399_v25  ;;  %4006 = vmatpush3.msra.mxu0 %v2333_v49 }
 0x72c   : > { %4045 = vmatprep.subr.mxu0 %v4399_v25  ;;  %3981 = vmatpush3.msra.mxu1 %v2338_v50 }
 0x72d   : > { %3982 = vmatprep.subr.mxu1 %v4399_v25 }
 0x72e   : > { %3974 = vmatmul.mubr.msk.f32.gmra.mxu0 %vm1234_vm8, %v4716_v56  ;;  %3983 = vmatpush3.msra.mxu1 %v2337_v53 }
 0x72f   : > { %4007 = vmatprep.mubr.msk.f32.mxu0 %vm4400_vm4, %v4399_v25  ;;  %4022 = vmatprep.subr.mxu1 %v4399_v25 }
 0x7da   : > { %v2219_v54 = vpop.f32.mrf.mxu0 }
 0x7db   : > { %4008 = vmatmul.mubr.msk.f32.vlgmr.msra.gmra.mxu0 %vm1140_vm1, %v2219_v54 }
 0x7dc   : > { %v3944_v55 = vpop.f32.mrf.mxu0  ;;  %v2224_v56 = vpop.f32.mrf.mxu1  ;;  %4010 = vmatprep.mubr.msk.f32.mxu0 %vm4400_vm4, %v4399_v25 }
 0x7de   : > { %v2309_v1 = vpop.f32.mrf.mxu0  ;;  %v3947_v3 = vpop.f32.mrf.mxu1 }
 0x7df   : > { %3985 = vmatmul.mubr.msk.f32.vlgmr.msra.gmra.mxu1 %vm1140_vm1, %v2309_v1  ;;  %4011 = vmatmul.mubr.msk.f32.gmra.mxu0 %vm1140_vm1, %v2224_v56 }
 0x7e0   : > { %v3963_v6 = vpop.f32.mrf.mxu0  ;;  %3987 = vmatprep.mubr.msk.f32.mxu1 %vm4400_vm4, %v4399_v25  ;;  %4023 = vmatpush3.msra.mxu1 %v2554_v0  ;;  %v2229_v8 = vpop.f32.mrf.mxu1 }
 0x7e1   : > { %4024 = vmatprep.subr.mxu1 %v4399_v25  ;;  %4013 = vmatprep.mubr.msk.f32.mxu0 %vm4400_vm4, %v4399_v25 }
 0x7e2   : > { %v2314_v12 = vpop.f32.mrf.mxu0  ;;  %4025 = vmatpush3.msra.mxu1 %v2553_v4  ;;  %v3950_v13 = vpop.f32.mrf.mxu1 }
 0x7e3   : > { %3988 = vmatmul.mubr.msk.f32.gmra.mxu1 %vm1140_vm1, %v2314_v12  ;;  %4026 = vmatprep.subr.mxu1 %v4399_v25 }
 0x7e4   : > { %v3966_v15 = vpop.f32.mrf.mxu0  ;;  %3990 = vmatprep.mubr.msk.f32.mxu1 %vm4400_vm4, %v4399_v25  ;;  %4027 = vmatpush3.msra.mxu1 %v2552_v11  ;;  %v2234_v16 = vpop.f32.mrf.mxu1 }
 0x7e5   : > { %4014 = vmatmul.mubr.msk.f32.gmra.mxu0 %vm1140_vm1, %v2229_v8  ;;  %4028 = vmatprep.subr.mxu1 %v4399_v25 }
 0x7e6   : > { %v2319_v17 = vpop.f32.mrf.mxu0  ;;  %4029 = vmatpush3.msra.mxu1 %v2551_v14  ;;  %4016 = vmatprep.mubr.msk.f32.mxu0 %vm4400_vm4, %v4399_v25  ;;  %v3953_v18 = vpop.f32.mrf.mxu1 }
 0x7e7   : > { %3991 = vmatmul.mubr.msk.f32.gmra.mxu1 %vm1140_vm1, %v2319_v17  ;;  %4068 = vmatprep.subr.mxu1 %v4399_v25 }
 0x7e8   : > { %v3969_v19 = vpop.f32.mrf.mxu0  ;;  %3993 = vmatprep.mubr.msk.f32.mxu1 %vm4400_vm4, %v4399_v25  ;;  %v2239_v20 = vpop.f32.mrf.mxu1 }
 0x7e9   : > { %4017 = vmatmul.mubr.msk.f32.gmra.mxu0 %vm1140_vm1, %v2234_v16 }
 0x7ea   : > { %v2324_v21 = vpop.f32.mrf.mxu0  ;;  %4019 = vmatprep.mubr.msk.f32.mxu0 %vm4400_vm4, %v4399_v25  ;;  %v3956_v22 = vpop.f32.mrf.mxu1 }
 0x7eb   : > { %3994 = vmatmul.mubr.msk.f32.gmra.mxu1 %vm1140_vm1, %v2324_v21 }
 0x7ec   : > { %v3972_v23 = vpop.f32.mrf.mxu0  ;;  %3996 = vmatprep.mubr.msk.f32.mxu1 %vm4400_vm4, %v4399_v25 }
 0x7ed   : > { %4020 = vmatmul.mubr.msk.f32.gmra.mxu0 %vm1140_vm1, %v2239_v20 }
 0x7ee   : > { %v2329_v24 = vpop.f32.mrf.mxu0  ;;  %4053 = vmatprep.mubr.msk.f32.mxu0 %vm4400_vm4, %v4399_v25 }
 0x7ef   : > { %3997 = vmatmul.mubr.msk.f32.gmra.mxu1 %vm1140_vm1, %v2329_v24 }
 0x7f0   : > { %4030 = vmatprep.mubr.msk.f32.mxu1 %vm4400_vm4, %v4399_v25  ;;  %v3975_v26 = vpop.f32.mrf.mxu0 }
 0x7f3   : > { %4031 = vmatmul.mubr.msk.f32.vlgmr.msra.gmra.mxu1 %vm1140_vm1, %v4801_v10  ;;  %v2707_v10 = vld [vmem:[%s5160_s3 + $0x8] sm:$0xff] }
 0x7f4   : > { %4033 = vmatprep.mubr.msk.f32.mxu1 %vm4400_vm4, %v4399_v25 }
 0x7f7   : > { %4034 = vmatmul.mubr.msk.f32.gmra.mxu1 %vm1140_vm1, %v4797_v9  ;;  %v2709_v9 = vld [vmem:[%s5160_s3 + $0x18] sm:$0xff] }
 0x7f8   : > { %4036 = vmatprep.mubr.msk.f32.mxu1 %vm4400_vm4, %v4399_v25  ;;  %4046 = vmatpush3.msra.mxu0 %v2709_v9 }
 0x7f9   : > { %4047 = vmatprep.subr.mxu0 %v4399_v25 }
 0x7fb   : > { %4037 = vmatmul.mubr.msk.f32.gmra.mxu1 %vm1140_vm1, %v4793_v7  ;;  %v2708_v7 = vld [vmem:[%s5160_s3 + $0x10] sm:$0xff] }
 0x7fc   : > { %4039 = vmatprep.mubr.msk.f32.mxu1 %vm4400_vm4, %v4399_v25  ;;  %4048 = vmatpush3.msra.mxu0 %v2708_v7 }
 0x7fd   : > { %4049 = vmatprep.subr.mxu0 %v4399_v25 }
 0x7fe   : > { %4050 = vmatpush3.msra.mxu0 %v2707_v10 }
 0x7ff   : > { %4040 = vmatmul.mubr.msk.f32.gmra.mxu1 %vm1140_vm1, %v4789_v5  ;;  %4051 = vmatprep.subr.mxu0 %v4399_v25  ;;  %v2706_v5 = vld [vmem:[%s5160_s3] sm:$0xff]  ;;  %s5164_s3 = sld [smem:[#allocation31_spill]] }
 0x800   : > { %4042 = vmatprep.mubr.msk.f32.mxu1 %vm4400_vm4, %v4399_v25  ;;  %4052 = vmatpush3.msra.mxu0 %v2706_v5 }
 0x801   : > { %4081 = vmatprep.subr.mxu0 %v4399_v25 }
 0x803   : > { %4043 = vmatmul.mubr.msk.f32.gmra.mxu1 %vm1140_vm1, %v4783_v2 }
 0x804   : > { %4078 = vmatprep.mubr.msk.f32.mxu1 %vm4400_vm4, %v4399_v25 }
 0x89b   : > { %v2527_v2 = vpop.f32.mrf.mxu0 }
 0x89d   : > { %v4009_v27 = vpop.f32.mrf.mxu0 }
 0x89f   : > { %v2422_v28 = vpop.f32.mrf.mxu1  ;;  %v2532_v29 = vpop.f32.mrf.mxu0 }
 0x8a0   : > { %v2528_v52 = vadd.f32 %v2527_v2, %v2422_v28 }
 0x8a1   : > { %v3986_v30 = vpop.f32.mrf.mxu1  ;;  %v4012_v31 = vpop.f32.mrf.mxu0 }
 0x8a3   : > { %v2427_v32 = vpop.f32.mrf.mxu1 }
 0x8a4   : > { %v2533_v61 = vadd.f32 %v2532_v29, %v2427_v32 }
 0x8a5   : > { %v3989_v33 = vpop.f32.mrf.mxu1  ;;  %v2537_v34 = vpop.f32.mrf.mxu0 }
 0x8a7   : > { %v2432_v35 = vpop.f32.mrf.mxu1  ;;  %v4015_v36 = vpop.f32.mrf.mxu0 }
 0x8a8   : > { %v2538_v46 = vadd.f32 %v2537_v34, %v2432_v35  ;;  %v2853_v34 = vld [vmem:[#allocation2] sm:$0x1]  ;;  %v4401_v35 = vmov 0   ;;  %v2952_v36 = vld [vmem:[#allocation3] sm:$0x1] }
 0x8a9   : > { %v3992_v37 = vpop.f32.mrf.mxu1  ;;  %v2542_v38 = vpop.f32.mrf.mxu0  ;;  %4210 = vset.pattern.permute.xlu0 %v4401_v35 }
 0x8aa   : > { %2856 = vperm.xlu0 %4210, %v2853_v34  }
 0x8ab   : > { %v2437_v39 = vpop.f32.mrf.mxu1  ;;  %v4018_v42 = vpop.f32.mrf.mxu0 }
 0x8ac   : > { %v2543_v0 = vadd.f32 %v2542_v38, %v2437_v39 }
 0x8ad   : > { %v3995_v43 = vpop.f32.mrf.mxu1  ;;  %v2547_v44 = vpop.f32.mrf.mxu0 }
 0x8ae   : > { %2955 = vperm.xlu0 %4210, %v2952_v36  }
 0x8af   : > { %v2442_v47 = vpop.f32.mrf.mxu1  ;;  %v4021_v48 = vpop.f32.mrf.mxu0 }
 0x8b0   : > { %v2548_v12 = vadd.f32 %v2547_v44, %v2442_v47  ;;  %v3597_v47 = vld [vmem:[%s5162_s5] ss:$0 sm:$0xff]  ;;  %s5163_s5 = sld [smem:[#allocation30_spill]] }
 0x8b1   : > { %v3998_v51 = vpop.f32.mrf.mxu1 }
 0x8b3   : > { %v2635_v57 = vpop.f32.mrf.mxu1 }
 0x8b4   : > { %v2659_v59 = vadd.f32 %v2635_v57, %v2528_v52 }
 0x8b5   : > { %v4032_v60 = vpop.f32.mrf.mxu1 }
 0x8b6   : > { %v2671_v62 = vadd.f32 %v3591_v58, %v2659_v59 }
 0x8b7   : > { %v2640_v63 = vpop.f32.mrf.mxu1 }
 0x8b8   : > { %v2681_v40 = vmin.f32 %v2671_v62, 0.0  ;;  %v2660_v41 = vadd.f32 %v2640_v63, %v2533_v61  ;;  %vm2676_vm12 = vcmp.gt.f32.partialorder %v2671_v62, 0.0 }
 0x8b9   : > { %v4035_v45 = vpop.f32.mrf.mxu1 }
 0x8ba   : > { %v2686_v49 = vmul.f32 1.442695, %v2681_v40  ;;  %v2672_v50 = vadd.f32 %v3591_v58, %v2660_v41 }
 0x8bb   : > { %v2645_v53 = vpop.f32.mrf.mxu1 }
 0x8bc   : > { %4247 = vpow2.f32 %v2686_v49  ;;  %v2682_v54 = vmin.f32 %v2672_v50, 0.0  ;;  %v2661_v55 = vadd.f32 %v2645_v53, %v2538_v46  ;;  %vm2677_vm13 = vcmp.gt.f32.partialorder %v2672_v50, 0.0 }
 0x8bd   : > { %v4038_v56 = vpop.f32.mrf.mxu1 }
 0x8be   : > { %v2688_v1 = vmul.f32 1.442695, %v2682_v54  ;;  %v2673_v3 = vadd.f32 %v3591_v58, %v2661_v55 }
 0x8bf   : > { %v2650_v4 = vpop.f32.mrf.mxu1 }
 0x8c0   : > { %4249 = vpow2.f32 %v2688_v1  ;;  %v2683_v6 = vmin.f32 %v2673_v3, 0.0  ;;  %v2662_v8 = vadd.f32 %v2650_v4, %v2543_v0  ;;  %vm2678_vm15 = vcmp.gt.f32.partialorder %v2673_v3, 0.0 }
 0x8c1   : > { %v4041_v11 = vpop.f32.mrf.mxu1 }
 0x8c2   : > { %v2690_v13 = vmul.f32 1.442695, %v2683_v6  ;;  %v2674_v14 = vadd.f32 %v3591_v58, %v2662_v8 }
 0x8c3   : > { %v2655_v15 = vpop.f32.mrf.mxu1 }
 0x8c4   : > { %4251 = vpow2.f32 %v2690_v13  ;;  %v2684_v16 = vmin.f32 %v2674_v14, 0.0  ;;  %v2663_v17 = vadd.f32 %v2655_v15, %v2548_v12  ;;  %vm2679_vm0 = vcmp.gt.f32.partialorder %v2674_v14, 0.0 }
 0x8c5   : > { %v4044_v18 = vpop.f32.mrf.mxu1 }
 0x8c6   : > { %v2692_v19 = vmul.f32 1.442695, %v2684_v16  ;;  %v2675_v20 = vadd.f32 %v3591_v58, %v2663_v17 }
 0x8c8   : > { %4253 = vpow2.f32 %v2692_v19  ;;  %v2685_v21 = vmin.f32 %v2675_v20, 0.0  ;;  %vm2680_vm2 = vcmp.gt.f32.partialorder %v2675_v20, 0.0  ;;  %v2852_v19 = vld [vmem:[%s5163_s5] sm:$0x1]  ;;  %s1013_s5 = scalar_lea.vmem %s5167_s4, %s4622_s26 }
 0x8c9   : > { %v4248_v22 = vpop.eup %4247 }
 0x8ca   : > { %v3592_v23 = vadd.f32 -1.0, %v4248_v22  ;;  %v2694_v24 = vmul.f32 1.442695, %v2685_v21  ;;  %v3059_v21 = vld [vmem:[%s5165_s6 + $0x20] sm:$0xf]  ;;  %v3058_v22 = vld [vmem:[%s5165_s6 + $0x18] sm:$0xff] }
 0x8cc   : > { %v2701_v26 = vsel %vm2676_vm12, %v2671_v62, %v3592_v23  ;;  %4255 = vpow2.f32 %v2694_v24  ;;  %v3057_v23 = vld [vmem:[%s5165_s6 + $0x10] sm:$0xff]  ;;  %v3056_v24 = vld [vmem:[%s5165_s6 + $0x8] sm:$0xff] }
 0x8cd   : > { %v4250_v9 = vpop.eup %4249  ;;  %4054 = vmatmul.mubr.msk.f32.vlgmr.msra.gmra.mxu0 %vm1140_vm1, %v2701_v26  ;;  %v3055_v26 = vld [vmem:[%s5165_s6] sm:$0xff] }
 0x8ce   : > { %4056 = vmatprep.mubr.msk.f32.mxu0 %vm4400_vm4, %v4399_v25  ;;  %v3593_v7 = vadd.f32 -1.0, %v4250_v9  ;;  %v3137_v9 = vld [vmem:[%s5166_s8 + $0x8] sm:$0xf] }
 0x8d0   : > { %v2702_v10 = vsel %vm2677_vm13, %v2672_v50, %v3593_v7  ;;  %v2859_v7 = vlaneseq }
 0x8d1   : > { %v4252_v5 = vpop.eup %4251  ;;  %4057 = vmatmul.mubr.msk.f32.gmra.mxu0 %vm1140_vm1, %v2702_v10 }
 0x8d2   : > { %4059 = vmatprep.mubr.msk.f32.mxu0 %vm4400_vm4, %v4399_v25  ;;  %v3594_v2 = vadd.f32 -1.0, %v4252_v5  ;;  %v2860_v5 = vshrl.u32 %v2859_v7, 7 }
 0x8d4   : > { %v2703_v27 = vsel %vm2678_vm15, %v2673_v3, %v3594_v2  ;;  %v2861_v2 = vsub.s32 0, %v2860_v5 }
 0x8d5   : > { %v4254_v28 = vpop.eup %4253  ;;  %4060 = vmatmul.mubr.msk.f32.gmra.mxu0 %vm1140_vm1, %v2703_v27 }
 0x8d6   : > { %4062 = vmatprep.mubr.msk.f32.mxu0 %vm4400_vm4, %v4399_v25  ;;  %v3595_v29 = vadd.f32 -1.0, %v4254_v28 }
 0x8d8   : > { %v2704_v30 = vsel %vm2679_vm0, %v2674_v14, %v3595_v29 }
 0x8d9   : > { %v4256_v31 = vpop.eup %4255  ;;  %4063 = vmatmul.mubr.msk.f32.gmra.mxu0 %vm1140_vm1, %v2704_v30 }
 0x8da   : > { %4065 = vmatprep.mubr.msk.f32.mxu0 %vm4400_vm4, %v4399_v25  ;;  %v3596_v32 = vadd.f32 -1.0, %v4256_v31 }
 0x8dc   : > { %v2705_v33 = vsel %vm2680_vm2, %v2675_v20, %v3596_v32  ;;  %v2951_v20 = vld [vmem:[%s5164_s3] sm:$0x1]  ;;  %s1010_s3 = scalar_lea.vmem %s4550_s27, %s4622_s26  ;;  %s5035_s26 = sand.u32 1, %s4357_s2  }
 0x8dd   : > { %4066 = vmatmul.mubr.msk.f32.gmra.mxu0 %vm1140_vm1, %v2705_v33  ;;  %s1002_s6 = scalar_lea.vmem [#allocation6], %s5035_s26  ;;  %s3308_s12 = scalar_lea.sflag [#allocation5], %s5035_s26 }
 0x8de   : > { %4091 = vmatprep.mubr.msk.f32.mxu0 %vm4400_vm4, %v4399_v25 }
 0x925   : > { %v2857_v10 = vpop.permute.xlu0 %2856 }
 0x926   : > { %v2862_v28 = vrot.slane %v2857_v10, %v2861_v2 }
 0x929   : > { %v2956_v27 = vpop.permute.xlu0 %2955 }
 0x92a   : > { %v2961_v29 = vrot.slane %v2956_v27, %v2861_v2 }
 0x98d   : > { %v2798_v37 = vpop.f32.mrf.mxu0 }
 0x98e   : > { %v2799_v46 = vadd.f32 %v3597_v47, %v2798_v37 }
 0x98f   : > { %v4055_v38 = vpop.f32.mrf.mxu0 }
 0x990   : > { %v2827_v53 = vmin.f32 %v2799_v46, 0.0  ;;  %vm2822_vm10 = vcmp.gt.f32.partialorder %v2799_v46, 0.0 }
 0x991   : > { %v2803_v39 = vpop.f32.mrf.mxu0 }
 0x992   : > { %v2804_v63 = vadd.f32 %v3597_v47, %v2803_v39  ;;  %v2832_v55 = vmul.f32 1.442695, %v2827_v53 }
 0x993   : > { %v4058_v42 = vpop.f32.mrf.mxu0 }
 0x994   : > { %v2828_v49 = vmin.f32 %v2804_v63, 0.0  ;;  %vm2823_vm9 = vcmp.gt.f32.partialorder %v2804_v63, 0.0 }
 0x995   : > { %v2808_v43 = vpop.f32.mrf.mxu0 }
 0x996   : > { %v2809_v57 = vadd.f32 %v3597_v47, %v2808_v43  ;;  %v2834_v54 = vmul.f32 1.442695, %v2828_v49 }
 0x997   : > { %v4061_v44 = vpop.f32.mrf.mxu0 }
 0x998   : > { %v2829_v40 = vmin.f32 %v2809_v57, 0.0  ;;  %vm2824_vm7 = vcmp.gt.f32.partialorder %v2809_v57, 0.0 }
 0x999   : > { %v2813_v48 = vpop.f32.mrf.mxu0 }
 0x99a   : > { %v2814_v51 = vadd.f32 %v3597_v47, %v2813_v48  ;;  %v2836_v50 = vmul.f32 1.442695, %v2829_v40 }
 0x99b   : > { %v4064_v52 = vpop.f32.mrf.mxu0 }
 0x99c   : > { %v2830_v58 = vmin.f32 %v2814_v51, 0.0  ;;  %vm2825_vm6 = vcmp.gt.f32.partialorder %v2814_v51, 0.0 }
 0x99d   : > { %v2818_v59 = vpop.f32.mrf.mxu0 }
 0x99e   : > { %v2819_v60 = vadd.f32 %v3597_v47, %v2818_v59  ;;  %v2838_v61 = vmul.f32 1.442695, %v2830_v58 }
 0x99f   : > { %v4067_v62 = vpop.f32.mrf.mxu0 }
 0x9a0   : > { %v2831_v41 = vmin.f32 %v2819_v60, 0.0  ;;  %4257 = vpow2.f32 %v2838_v61  ;;  %vm2826_vm3 = vcmp.gt.f32.partialorder %v2819_v60, 0.0  ;;  %v3136_v61 = vld [vmem:[%s5166_s8] sm:$0xff]  ;;  %s3343_s8 = sshll.u32 %s1002_s6, 4  ;;  %s5048_s8 = int_to_ptr.vmem [resolvable:$true] %s3343_s8 }
 0x9a2   : > { %v2840_v45 = vmul.f32 1.442695, %v2831_v41 }
 0x9a4   : > { %4259 = vpow2.f32 %v2840_v45 }
 0x9a5   : > { %4261 = vpow2.f32 %v2836_v50 }
 0x9a6   : > { %4263 = vpow2.f32 %v2834_v54 }
 0x9a7   : > { %4265 = vpow2.f32 %v2832_v55 }
 0x9ad   : > { %v4258_v56 = vpop.eup %4257 }
 0x9ae   : > { %v3606_v3 = vadd.f32 -1.0, %v4258_v56 }
 0x9b0   : > { %v2850_v11 = vsel %vm2825_vm6, %v2814_v51, %v3606_v3 }
 0x9b1   : > { %v4260_v0 = vpop.eup %4259 }
 0x9b2   : > { %v3607_v1 = vadd.f32 -1.0, %v4260_v0  ;;  %v4262_v6 = vpop.eup %4261 }
 0x9b3   : > { %v3605_v8 = vadd.f32 -1.0, %v4262_v6  ;;  %v4264_v12 = vpop.eup %4263 }
 0x9b4   : > { %v2851_v4 = vsel %vm2826_vm3, %v2819_v60, %v3607_v1  ;;  %v3604_v13 = vadd.f32 -1.0, %v4264_v12  ;;  %v4266_v15 = vpop.eup %4265 }
 0x9b5   : > { %4069 = vmatpush3.xpose.msk.msra.mxu1 %vm1140_vm1, %v2851_v4  ;;  %4082 = vmatpush3.xpose.msk.msra.mxu0 %vm1140_vm1, %v2851_v4  ;;  %v2849_v14 = vsel %vm2824_vm7, %v2809_v57, %v3605_v8  ;;  %v3603_v16 = vadd.f32 -1.0, %v4266_v15 }
 0x9b6   : > { %4070 = vmatprep.subr.mxu1 %v4399_v25  ;;  %4083 = vmatprep.subr.mxu0 %v4399_v25  ;;  %v2848_v17 = vsel %vm2823_vm9, %v2804_v63, %v3604_v13 }
 0x9b7   : > { %v2847_v18 = vsel %vm2822_vm10, %v2799_v46, %v3603_v16 }
 0x9b9   : > { %4071 = vmatpush3.xpose.msk.msra.mxu1 %vm1140_vm1, %v2850_v11  ;;  %4084 = vmatpush3.xpose.msk.msra.mxu0 %vm1140_vm1, %v2850_v11 }
 0x9ba   : > { %4072 = vmatprep.subr.mxu1 %v4399_v25  ;;  %4085 = vmatprep.subr.mxu0 %v4399_v25 }
 0x9bd   : > { %4073 = vmatpush3.xpose.msk.msra.mxu1 %vm1140_vm1, %v2849_v14  ;;  %4086 = vmatpush3.xpose.msk.msra.mxu0 %vm1140_vm1, %v2849_v14 }
 0x9be   : > { %4074 = vmatprep.subr.mxu1 %v4399_v25  ;;  %4087 = vmatprep.subr.mxu0 %v4399_v25 }
 0x9c1   : > { %4075 = vmatpush3.xpose.msk.msra.mxu1 %vm1140_vm1, %v2848_v17  ;;  %4088 = vmatpush3.xpose.msk.msra.mxu0 %vm1140_vm1, %v2848_v17 }
 0x9c2   : > { %4076 = vmatprep.subr.mxu1 %v4399_v25  ;;  %4089 = vmatprep.subr.mxu0 %v4399_v25 }
 0x9c5   : > { %4077 = vmatpush3.xpose.msk.msra.mxu1 %vm1140_vm1, %v2847_v18  ;;  %4090 = vmatpush3.xpose.msk.msra.mxu0 %vm1140_vm1, %v2847_v18 }
 0x9c6   : > { %4094 = vmatprep.subr.mxu1 %v4399_v25  ;;  %4107 = vmatprep.subr.mxu0 %v4399_v25 }
 0x9c8   : > { %4079 = vmatmul.mubr.msk.f32.vlgmr.msra.gmra.mxu1 %vm1140_vm1, %v2852_v19  ;;  %4092 = vmatmul.mubr.msk.f32.vlgmr.msra.gmra.mxu0 %vm1140_vm1, %v2951_v20  ;;  %vm3052_vm1 = vcmask 286720  }
 0x9c9   : > { %4095 = vmatpush3.msk.msra.mxu1 %vm1250_vm5, %v3059_v21  ;;  %4104 = vmatprep.mubr.msk.f32.mxu1 %vm4400_vm4, %v4399_v25 }
 0x9ca   : > { %4096 = vmatprep.subr.mxu1 %v4399_v25  ;;  %4111 = vmatprep.mubr.msk.f32.mxu0 %vm4400_vm4, %v4399_v25 }
 0x9cb   : > { %4097 = vmatpush3.msra.mxu1 %v3058_v22  ;;  %4108 = vmatpush3.msk.msra.mxu0 %vm1250_vm5, %v3137_v9 }
 0x9cc   : > { %4098 = vmatprep.subr.mxu1 %v4399_v25  ;;  %4109 = vmatprep.subr.mxu0 %v4399_v25 }
 0x9cd   : > { %4099 = vmatpush3.msra.mxu1 %v3057_v23  ;;  %4110 = vmatpush3.msra.mxu0 %v3136_v61 }
 0x9ce   : > { %4100 = vmatprep.subr.mxu1 %v4399_v25 }
 0x9cf   : > { %4101 = vmatpush3.msra.mxu1 %v3056_v24 }
 0x9d0   : > { %4102 = vmatprep.subr.mxu1 %v4399_v25 }
 0x9d1   : > { %4103 = vmatpush3.msra.mxu1 %v3055_v26 }
 0x9d2   : > { %4114 = vmatprep.subr.mxu1 %v4399_v25 }
 0xa88   : > { %v2947_v30 = vpop.f32.mrf.mxu1  ;;  %v3031_v31 = vpop.f32.mrf.mxu0 }
 0xa89   : > { %v2948_v32 = vadd.f32 %v2947_v30, %v2862_v28  ;;  %v3032_v33 = vadd.f32 %v3031_v31, %v2961_v29 }
 0xa8a   : > { %v4080_v34 = vpop.f32.mrf.mxu1  ;;  %v4093_v35 = vpop.f32.mrf.mxu0 }
 0xa8b   : > { %3053 = vst.msk [vmem:[%s1010_s3] sm:$0x1] %vm3052_vm1, %v2948_v32  ;;  %v3036_v36 = vand.u32 2147483647, %v3032_v33  ;;  %4105 = vmatmul.mubr.msk.f32.vlgmr.msra.gmra.mxu1 %vm1857_vm14, %v2948_v32  ;;  %v3035_v57 = vmax.f32 %v3032_v33, 0.0  ;;  %s3626_s3 = sshll.u32 %s4591_s0, 4 }
 0xa8c   : > { %4115 = vmatpush3.msk.msra.mxu1 %vm1250_vm5, %v3059_v21  ;;  %4124 = vmatprep.mubr.msk.f32.mxu1 %vm4400_vm4, %v4399_v25  ;;  %vm3296_vm5 = vcmask 90112   ;;  %s5041_s9 = scalar_lea.hbm %s4560_s20, %s3626_s3  ;;  %s5046_s0 = scalar_lea.hbm %s4565_s21, %s3626_s3 }
 0xa8d   : > { %v3037_v37 = vsub.f32 0.0, %v3036_v36  ;;  %4116 = vmatprep.subr.mxu1 %v4399_v25 }
 0xa8e   : > { %4117 = vmatpush3.msra.mxu1 %v3058_v22 }
 0xa8f   : > { %v3038_v38 = vmul.f32 1.442695, %v3037_v37  ;;  %4118 = vmatprep.subr.mxu1 %v4399_v25 }
 0xa90   : > { %4119 = vmatpush3.msra.mxu1 %v3057_v23 }
 0xa91   : > { %4267 = vpow2.f32 %v3038_v38  ;;  %4120 = vmatprep.subr.mxu1 %v4399_v25 }
 0xa92   : > { %4121 = vmatpush3.msra.mxu1 %v3056_v24 }
 0xa93   : > { %4122 = vmatprep.subr.mxu1 %v4399_v25 }
 0xa94   : > { %4123 = vmatpush3.msra.mxu1 %v3055_v26 }
 0xa9e   : > { %v4268_v39 = vpop.eup %4267 }
 0xa9f   : > { %v3040_v42 = vadd.f32 1.0, %v4268_v39  ;;  %v3043_v43 = vmul.f32 -0.5, %v4268_v39  ;;  %v3046_v47 = vand.u32 2147483647, %v4268_v39 }
 0xaa1   : > { %4269 = vlog2.f32 %v3040_v42  ;;  %v3044_v44 = vadd.f32 1.0, %v3043_v43  ;;  %vm3047_vm4 = vcmp.lt.f32.partialorder %v3046_v47, 0.0004427343 }
 0xaa3   : > { %v3045_v52 = vmul.f32 %v4268_v39, %v3044_v44 }
 0xaae   : > { %v4270_v48 = vpop.eup %4269 }
 0xaaf   : > { %v3042_v51 = vmul.f32 0.6931472, %v4270_v48 }
 0xab1   : > { %v3048_v58 = vsel %vm3047_vm4, %v3045_v52, %v3042_v51 }
 0xab2   : > { %v3049_v59 = vadd.f32 %v3048_v58, %v3035_v57 }
 0xab4   : > { %v3050_v60 = vmax.f32 %v3049_v59, 1e-08 }
 0xab6   : > { %v3051_v25 = vmin.f32 %v3050_v60, 100.0 }
 0xab8   : > { %3054 = vst.msk [vmem:[%s1013_s5] sm:$0x1] %vm3052_vm1, %v3051_v25  ;;  %s996_s5 = scalar_lea.vmem [#allocation4], %s5035_s26 }
 0xab9   : > { %s3330_s4 = sshll.u32 %s996_s5, 4  ;;  %s5043_s4 = int_to_ptr.vmem [resolvable:$true] %s3330_s4 }
 0xaba   : > { %s4275_s13 = scalar_lea.vmem %s5043_s4, 16  ;;  %p4282_p0 = scmp.lt.s32.totalorder %s5043_s4, %s4280_s15 }
 0xabb   : > { %p4276_p11 = scmp.ne.s32.totalorder %s5043_s4, %s4275_s13  ;;  %p4283_p1 = scmp.lt.s32.totalorder %s4281_s16, %s4275_s13 }
 0xabd   : > { %p4277_p12 = pnand %p4276_p11, %p4608_p5  ;;  %p4284_p2 = por %p4283_p1, %p4282_p0 }
 0xabf   : > { %p4278_p13 = pneg %p4277_p12 }
 0xac1   : > { %p4285_p3 = pnand %p4284_p2, %p4278_p13 }
 0xb4b   : > { %v3132_v62 = vpop.f32.mrf.mxu1 }
 0xb4c   : > { %4112 = vmatmul.mubr.msk.f32.vlgmr.msra.gmra.mxu0 %vm1234_vm8, %v3132_v62 }
 0xb4d   : > { %v4106_v63 = vpop.f32.mrf.mxu1 }
 0xc0c   : > { %v3210_v40 = vpop.f32.mrf.mxu0 }
 0xc0d   : > { %v3214_v41 = vsub.f32 %v2948_v32, %v3210_v40 }
 0xc0e   : > { %v4113_v45 = vpop.f32.mrf.mxu0 }
 0xc0f   : > { %v3215_v46 = vmul.f32 %v3214_v41, %v3214_v41 }
 0xc11   : > { %4125 = vmatmul.mubr.msk.f32.vlgmr.msra.gmra.mxu1 %vm1857_vm14, %v3215_v46 }
 0xcd1   : > { %v3285_v49 = vpop.f32.mrf.mxu1 }
 0xcd2   : > { %4271 = vrcp.f32 %v3285_v49 }
 0xcd3   : > { %v4126_v50 = vpop.f32.mrf.mxu1 }
 0xcdf   : > { %v4272_v53 = vpop.eup %4271 }
 0xce0   : > { %v3290_v54 = vmul.f32 3.0, %v4272_v53 }
 0xce2   : > { %v3291_v55 = vadd.f32 1.0, %v3290_v54 }
 0xce4   : > { %4273 = vrcp.f32 %v3291_v55 }
 0xcf1   : > { %v4274_v56 = vpop.eup %4273 }
 0xcf2   : > { %v3294_v0 = vmul.f32 %v4274_v56, %v3290_v54  ;;  %v3298_v1 = vmax.f32 %v4274_v56, 1e-08 }
 0xcf4   : > { %v3295_v3 = vmul.f32 %v3294_v0, %v3132_v62  ;;  %v3299_v4 = vmin.f32 %v3298_v1, 100.0 }
 0xcf6   : > { %3297 = vst.msk [vmem:[%s996_s5] sm:$0x1] %vm3296_vm5, %v3295_v3  ;;  %3300 = vst.msk [vmem:[%s1002_s6] sm:$0x1] %vm3296_vm5, %v3299_v4 }
 0xcf7   : > { %4288 = shalt.err (!%p4285_p3)
}
 0xcf8   : > { %s4289_s6 = scalar_lea.hbm %s5041_s9, 16  ;;  %s4293_s3 = scalar_lea.hbm %s4560_s20, 32 }
 0xcf9   : > { %p4290_p4 = scmp.ne.s32.totalorder %s5041_s9, %s4289_s6  ;;  %p4294_p9 = scmp.lt.s32.totalorder %s5041_s9, %s4560_s20 }
 0xcfa   : > { %p4295_p10 = scmp.lt.s32.totalorder %s4293_s3, %s4289_s6 }
 0xcfb   : > { %p4291_p7 = pnand %p4290_p4, %p4608_p5 }
 0xcfc   : > { %p4296_p11 = por %p4295_p10, %p4294_p9 }
 0xcfd   : > { %p4292_p8 = pneg %p4291_p7 }
 0xcff   : > { %p4297_p12 = pnand %p4296_p11, %p4292_p8 }
 0xd01   : > { %4300 = shalt.err (!%p4297_p12)
}
 0xd02   : > { %4131 = dma.vmem_to_hbm [thread:$0]  (%p4608_p5), %s5043_s4, 16, %s5041_s9, %s3308_s12  }
 0xd03   : > { %s3312_s13 = scalar_lea.sflag [#allocation7], %s5035_s26  ;;  %s4301_s14 = scalar_lea.vmem %s5048_s8, 16 }
 0xd04   : > { %p4302_p13 = scmp.ne.s32.totalorder %s5048_s8, %s4301_s14  ;;  %s4403_s16 = smov [#allocation6]  }
 0xd05   : > { %s4305_s15 = sshll.u32 %s4403_s16, 4  ;;  %s4306_s15 = int_to_ptr.vmem [resolvable:$false] %s4305_s15 }
 0xd06   : > { %p4303_p0 = pnand %p4302_p13, %p4608_p5  ;;  %s4307_s5 = scalar_lea.vmem %s4306_s15, 32 }
 0xd07   : > { %p4308_p2 = scmp.lt.s32.totalorder %s5048_s8, %s4306_s15  ;;  %p4309_p3 = scmp.lt.s32.totalorder %s4307_s5, %s4301_s14 }
 0xd08   : > { %p4304_p1 = pneg %p4303_p0 }
 0xd09   : > { %p4310_p4 = por %p4309_p3, %p4308_p2 }
 0xd0b   : > { %p4311_p7 = pnand %p4310_p4, %p4304_p1 }
 0xd0d   : > { %4314 = shalt.err (!%p4311_p7)
}
 0xd0e   : > { %s4315_s9 = scalar_lea.hbm %s5046_s0, 16  ;;  %s4319_s12 = scalar_lea.hbm %s4565_s21, 32 }
 0xd0f   : > { %p4316_p8 = scmp.ne.s32.totalorder %s5046_s0, %s4315_s9  ;;  %p4320_p11 = scmp.lt.s32.totalorder %s5046_s0, %s4565_s21 }
 0xd10   : > { %p4321_p12 = scmp.lt.s32.totalorder %s4319_s12, %s4315_s9 }
 0xd11   : > { %p4317_p9 = pnand %p4316_p8, %p4608_p5 }
 0xd12   : > { %p4322_p13 = por %p4321_p12, %p4320_p11 }
 0xd13   : > { %p4318_p10 = pneg %p4317_p9 }
 0xd15   : > { %p4323_p0 = pnand %p4322_p13, %p4318_p10 }
 0xd17   : > { %4326 = shalt.err (!%p4323_p0)
}
 0xd18   : > { %4132 = dma.vmem_to_hbm [thread:$0]  (%p4608_p5), %s5048_s8, 16, %s5046_s0, %s3312_s13  }
 0xd19 PF: > { %p4142_p1 = scmp.ge.s32.totalorder %s4365_s7, 2  ;;  %s3367_s4 = sand.u32 1, %s4353_s1  }
 0xd1a   : > { %s3368_s26 = scalar_lea.sflag [#allocation5], %s3367_s4 }
 0xd1b   : > { %p4136_p2 = pnand %p4142_p1, %p4612_p6 }
 0xd1d   : > { %p4137_p3 = pneg %p4136_p2 }
 0xd1f   : > { %4344 = dma.done.wait (%p4137_p3), %s3368_s26, 16  }
 0xd20   : > { %4346 = vsyncadd (%p4137_p3), %s3368_s26, 4294967280  ;;  %s3376_s6 = scalar_lea.sflag [#allocation7], %s3367_s4 }
 0xd21   : > { %4348 = dma.done.wait (%p4137_p3), %s3376_s6, 16  }
 0xd22   : > { %4350 = vsyncadd (%p4137_p3), %s3376_s6, 4294967280  ;;  %p83_p5 = scmp.ge.s32.totalorder %s4595_s11, 4   ;;  %s5168_s1 = smov %s4357_s2 }
 0xd23   : > { %s5169_s2 = smov %s4361_s10  ;;  %s5170_s10 = smov %s4606_s18 }
 0xd24   : > { %s5171_s7 = smov %s4595_s11  ;;  %85 = sbr.rel (!%p83_p5) target bundleno = 69 (0x45), region = 244 }
 0xd29   :  { %3380 = vsyncpa [#allocation5], 1 }
 0xd2a   :  { %3382 = vsyncpa [#allocation5 + $0x1], 1 }
 0xd2b   :  { %3383 = vsyncpa [#allocation7], 1 }
 0xd2c   :  { %3385 = vsyncpa [#allocation7 + $0x1], 1 }

</bundles_post_ra>
